<compile_context>
chip_gen: v7x
topology: tpu7x:2x2x1
jax: 0.10.0
libtpu: 0.0.40
codegen_flags: <defaults>
</compile_context>

<pallas_src>
import jax
import jax.numpy as jnp
from jax.experimental import pallas as pl
from jax.experimental.pallas import tpu as pltpu


# ----------------------------------------------------------------------------
# Kernel 1: fused 1x1 conv (dim -> 3*dim) + depthwise 3x3 conv (pad=1),
# channels-last, one grid step per (batch, output-channel tile).
# ----------------------------------------------------------------------------
def _qkv_dwconv_kernel(x_ref, wq_ref, bq_ref, wdw_ref, bdw_ref, o_ref, pad_ref):
    # x_ref:   (1, H, W, Cin)        input tile (full channels)
    # wq_ref:  (Cin, Ct)             1x1-conv weight tile (transposed)
    # bq_ref:  (1, Ct)               1x1-conv bias tile
    # wdw_ref: (3, 3, Ct)            depthwise 3x3 weight tile
    # bdw_ref: (1, Ct)               depthwise bias tile
    # o_ref:   (1, H, W, Ct)         fused output tile
    # pad_ref: (H+2, W+2, Ct) f32    zero-padded scratch for the 3x3 taps
    H, W, Ct = o_ref.shape[1], o_ref.shape[2], o_ref.shape[3]
    Cin = x_ref.shape[3]

    # 1x1 conv == (H*W, Cin) @ (Cin, Ct) on the MXU, f32 accumulation.
    x2 = x_ref[...].reshape(H * W, Cin).astype(jnp.float32)
    y = jnp.dot(x2, wq_ref[...].astype(jnp.float32),
                preferred_element_type=jnp.float32)
    y = y + bq_ref[...].astype(jnp.float32)

    # Stage into the zero-padded scratch (pad=1 on both spatial dims).
    pad_ref[...] = jnp.zeros_like(pad_ref)
    pad_ref[1:H + 1, 1:W + 1, :] = y.reshape(H, W, Ct)

    # Depthwise 3x3: nine shifted multiply-accumulates on the VPU.
    acc = jnp.zeros((H, W, Ct), jnp.float32)
    for dh in range(3):
        for dw in range(3):
            tap = wdw_ref[dh:dh + 1, dw:dw + 1, :].astype(jnp.float32)  # (1,1,Ct)
            acc = acc + pad_ref[dh:dh + H, dw:dw + W, :] * tap
    acc = acc + bdw_ref[...].astype(jnp.float32).reshape(1, 1, Ct)
    o_ref[0] = acc.astype(o_ref.dtype)


def fused_qkv_dwconv(x_nhwc, w_qkv, b_qkv, w_dw, b_dw):
    """x_nhwc: (B,H,W,Cin); w_qkv: (3C,Cin); b_qkv: (3C,);
    w_dw: (3C,3,3); b_dw: (3C,).  Returns NHWC (B,H,W,3C)."""
    B, H, W, Cin = x_nhwc.shape
    C3 = w_qkv.shape[0]
    wt = jnp.transpose(w_qkv)                    # (Cin, 3C)
    w_dw_hwc = jnp.transpose(w_dw, (1, 2, 0))    # (3, 3, 3C)
    bq = b_qkv.reshape(1, C3)
    bd = b_dw.reshape(1, C3)

    # Lane-dense channel tile: full 3C when small, else a multiple of 128.
    ct = C3 if (C3 <= 512 or C3 % 128 != 0) else 512
    grid = (B, pl.cdiv(C3, ct))
    # TODO(synk): for very large H*W the whole-plane spatial block should be
    # halo-tiled over H to bound VMEM; fine at these shapes.

    return pl.pallas_call(
        _qkv_dwconv_kernel,
        out_shape=jax.ShapeDtypeStruct((B, H, W, C3), x_nhwc.dtype),
        grid_spec=pltpu.PrefetchScalarGridSpec(
            num_scalar_prefetch=0,
            grid=grid,
            in_specs=[
                pl.BlockSpec((1, H, W, Cin), lambda bi, ci: (bi, 0, 0, 0)),
                pl.BlockSpec((Cin, ct), lambda bi, ci: (0, ci)),
                pl.BlockSpec((1, ct), lambda bi, ci: (0, ci)),
                pl.BlockSpec((3, 3, ct), lambda bi, ci: (0, 0, ci)),
                pl.BlockSpec((1, ct), lambda bi, ci: (0, ci)),
            ],
            out_specs=pl.BlockSpec((1, H, W, ct), lambda bi, ci: (bi, 0, 0, ci)),
            scratch_shapes=[pltpu.VMEM((H + 2, W + 2, ct), jnp.float32)],
        ),
        compiler_params=pltpu.CompilerParams(
            dimension_semantics=("parallel", "parallel")),
    )(x_nhwc, wt, bq, w_dw_hwc, bd)


# ----------------------------------------------------------------------------
# Kernel 2: fused per-(batch, head) attention + output projection.
# Reads the head slab straight from the NHWC qkv tensor and writes NHWC out.
# ----------------------------------------------------------------------------
def _attn_proj_kernel(qkv_ref, temp_ref, wp_ref, bp_ref, o_ref):
    # qkv_ref: (1, H, WP, 3C)  head slab of the fused qkv output (NHWC)
    # temp_ref: (heads,) f32 in SMEM
    # wp_ref:  (C, C)          project_out weight (transposed)
    # bp_ref:  (1, C)          project_out bias
    # o_ref:   (1, H, WP, C)   NHWC output head slab
    head = pl.program_id(1)
    H, WP, C3 = qkv_ref.shape[1], qkv_ref.shape[2], qkv_ref.shape[3]
    C = C3 // 3

    q0 = qkv_ref[0, :, :, 0:C].astype(jnp.float32)          # (H, WP, C)
    k0 = qkv_ref[0, :, :, C:2 * C].astype(jnp.float32)      # (H, WP, C)
    v0 = qkv_ref[0, :, :, 2 * C:3 * C].astype(jnp.float32)  # (H, WP, C)

    # L2 norms over the full (c h) feature axis == the (H, C) axis pair here.
    qn = jnp.sqrt(jnp.sum(jnp.sum(q0 * q0, axis=2, keepdims=True), axis=0))  # (WP,1)
    kn = jnp.sqrt(jnp.sum(jnp.sum(k0 * k0, axis=2), axis=0, keepdims=True))  # (1,WP)
    inv_q = 1.0 / jnp.maximum(qn, 1e-12)
    inv_k = 1.0 / jnp.maximum(kn, 1e-12)

    # Raw scores: s[q, k] = sum_{h, c} q0[h, q, c] * k0[h, k, c]   (MXU).
    s = jnp.zeros((WP, WP), jnp.float32)
    for hi in range(H):
        s = s + jax.lax.dot_general(
            q0[hi], k0[hi], (((1,), (1,)), ((), ())),
            preferred_element_type=jnp.float32)

    # normalize(q) @ normalize(k)^T * temperature, then row softmax.
    s = s * (inv_q * inv_k) * temp_ref[head]
    s = s - jnp.max(s, axis=-1, keepdims=True)
    p = jnp.exp(s)
    p = p / jnp.sum(p, axis=-1, keepdims=True)

    # out = attn @ v, then the fused 1x1 projection, written back NHWC.
    wpt = wp_ref[...].astype(jnp.float32)
    bp = bp_ref[...].astype(jnp.float32)
    for hi in range(H):
        ov = jnp.dot(p, v0[hi], preferred_element_type=jnp.float32)        # (WP, C)
        out_hi = jnp.dot(ov, wpt, preferred_element_type=jnp.float32) + bp  # (WP, C)
        o_ref[0, hi] = out_hi.astype(o_ref.dtype)


def fused_attention_project(qkv_nhwc, temperature, w_proj, b_proj, num_heads):
    """qkv_nhwc: (B,H,W,3C); temperature: (heads,); w_proj: (C,C); b_proj: (C,).
    Returns NHWC (B,H,W,C)."""
    B, H, W, C3 = qkv_nhwc.shape
    C = C3 // 3
    WP = W // num_heads
    wpt = jnp.transpose(w_proj)                       # (C, C)
    bp = b_proj.reshape(1, C)
    temp = temperature.reshape(num_heads).astype(jnp.float32)

    return pl.pallas_call(
        _attn_proj_kernel,
        out_shape=jax.ShapeDtypeStruct((B, H, W, C), qkv_nhwc.dtype),
        grid_spec=pltpu.PrefetchScalarGridSpec(
            num_scalar_prefetch=0,
            grid=(B, num_heads),
            in_specs=[
                pl.BlockSpec((1, H, WP, C3), lambda bi, hi: (bi, 0, hi, 0)),
                pl.BlockSpec(memory_space=pltpu.MemorySpace.SMEM),
                pl.BlockSpec((C, C), lambda bi, hi: (0, 0)),
                pl.BlockSpec((1, C), lambda bi, hi: (0, 0)),
            ],
            out_specs=pl.BlockSpec((1, H, WP, C), lambda bi, hi: (bi, 0, hi, 0)),
        ),
        compiler_params=pltpu.CompilerParams(
            dimension_semantics=("parallel", "parallel")),
    )(qkv_nhwc, temp, wpt, bp)


# ----------------------------------------------------------------------------
# Full A_MSA forward (wrapper does only the NCHW<->NHWC layout transposes).
# ----------------------------------------------------------------------------
def a_msa_forward(x, params, num_heads):
    """x: (B, C, H, W) NCHW. Returns (B, C, H, W)."""
    b, c, h, w = x.shape
    assert w % num_heads == 0, "width must be divisible by num_heads_v"
    x_nhwc = jnp.transpose(x, (0, 2, 3, 1))                         # (b,h,w,c)
    qkv = fused_qkv_dwconv(x_nhwc, params['w_qkv'], params['b_qkv'],
                           params['w_dw'], params['b_dw'])          # (b,h,w,3c)
    out_nhwc = fused_attention_project(qkv, params['temperature'],
                                       params['w_proj'], params['b_proj'],
                                       num_heads)                   # (b,h,w,c)
    return jnp.transpose(out_nhwc, (0, 3, 1, 2))                    # NCHW


# ----------------------------------------------------------------------------
# Pure-JAX reference (mirrors the PyTorch module exactly).
# ----------------------------------------------------------------------------
def a_msa_reference(x, params, num_heads, use_bias):
    b, c, h, w = x.shape
    hp = jax.lax.Precision.HIGHEST
    qkv = jnp.einsum('oc,bchw->bohw', params['w_qkv'], x, precision=hp)
    if use_bias:
        qkv = qkv + params['b_qkv'][None, :, None, None]
    xp = jnp.pad(qkv, ((0, 0), (0, 0), (1, 1), (1, 1)))
    acc = jnp.zeros_like(qkv)
    for dh in range(3):
        for dw in range(3):
            tap = params['w_dw'][:, dh, dw][None, :, None, None]
            acc = acc + xp[:, :, dh:dh + h, dw:dw + w] * tap
    if use_bias:
        acc = acc + params['b_dw'][None, :, None, None]
    q0, k0, v0 = jnp.split(acc, 3, axis=1)
    wp_ = w // num_heads

    def to_heads(t):
        t = t.reshape(b, c, h, num_heads, wp_)
        t = jnp.transpose(t, (0, 3, 4, 1, 2))
        return t.reshape(b, num_heads, wp_, c * h)

    q, k, v = to_heads(q0), to_heads(k0), to_heads(v0)

    def l2n(t):
        n = jnp.sqrt(jnp.sum(t * t, axis=-1, keepdims=True))
        return t / jnp.maximum(n, 1e-12)

    q, k = l2n(q), l2n(k)
    attn = jnp.einsum('bhqd,bhkd->bhqk', q, k, precision=hp)
    attn = attn * params['temperature'].reshape(1, num_heads, 1, 1)
    attn = jax.nn.softmax(attn, axis=-1)
    out = jnp.einsum('bhqk,bhkd->bhqd', attn, v, precision=hp)
    out = out.reshape(b, num_heads, wp_, c, h)
    out = jnp.transpose(out, (0, 3, 4, 1, 2)).reshape(b, c, h, w)
    out = jnp.einsum('oc,bchw->bohw', params['w_proj'], out, precision=hp)
    if use_bias:
        out = out + params['b_proj'][None, :, None, None]
    return out


if __name__ == "__main__":
    # Small shapes consistent with the module: dim=32, 16x16 spatial, 2 heads.
    B, C, H, W = 2, 32, 16, 16
    num_heads_v = 2
    use_bias = False   # typical HFormer config (Conv2d(..., bias=False))

    key = jax.random.PRNGKey(0)
    ks = jax.random.split(key, 6)
    scale = 0.1
    x = jax.random.normal(ks[0], (B, C, H, W), dtype=jnp.float32)
    params = {
        'w_qkv': scale * jax.random.normal(ks[1], (3 * C, C), jnp.float32),
        'b_qkv': jnp.zeros((3 * C,), jnp.float32),
        'w_dw': scale * jax.random.normal(ks[2], (3 * C, 3, 3), jnp.float32),
        'b_dw': jnp.zeros((3 * C,), jnp.float32),
        'w_proj': scale * jax.random.normal(ks[3], (C, C), jnp.float32),
        'b_proj': jnp.zeros((C,), jnp.float32),
        'temperature': 0.5 + jax.random.uniform(ks[4], (num_heads_v,), jnp.float32),
    }

    out = a_msa_forward(x, params, num_heads_v)
    out = jax.block_until_ready(out)

    ref = a_msa_reference(x, params, num_heads_v, use_bias)
    assert out.shape == x.shape and out.dtype == x.dtype
    max_err = float(jnp.max(jnp.abs(out - ref)))
    assert jnp.allclose(out, ref, atol=2e-3, rtol=2e-3), f"max abs err = {max_err}"

    print("KERNEL_OK")
</pallas_src>

<mosaic_0001>
module attributes {stable_mosaic.version = 11 : i64} {
  func.func @_qkv_dwconv_kernel(%arg0: i32, %arg1: i32, %arg2: memref<1x16x16x32xf32, #tpu.memory_space<vmem>>, %arg3: memref<32x96xf32, #tpu.memory_space<vmem>>, %arg4: memref<1x96xf32, #tpu.memory_space<vmem>>, %arg5: memref<3x3x96xf32, #tpu.memory_space<vmem>>, %arg6: memref<1x96xf32, #tpu.memory_space<vmem>>, %arg7: memref<1x16x16x96xf32, #tpu.memory_space<vmem>>, %arg8: memref<18x18x96xf32, #tpu.memory_space<vmem>>) attributes {dimension_semantics = [#tpu.dimension_semantics<parallel>, #tpu.dimension_semantics<parallel>], iteration_bounds = array<i64: 2, 1>, scalar_prefetch = 0 : i64, scratch_operands = 1 : i64, tpu.core_type = #tpu.core_type<tc>, window_params = [{transform_indices = @transform_0, window_bounds = array<i64: 1, 16, 16, 32>}, {transform_indices = @transform_1, window_bounds = array<i64: 32, 96>}, {transform_indices = @transform_2, window_bounds = array<i64: 1, 96>}, {transform_indices = @transform_3, window_bounds = array<i64: 3, 3, 96>}, {transform_indices = @transform_4, window_bounds = array<i64: 1, 96>}, {transform_indices = @transform_5, window_bounds = array<i64: 1, 16, 16, 96>}]} {
    %c0 = arith.constant 0 : index
    %c0_0 = arith.constant 0 : index
    %c0_1 = arith.constant 0 : index
    %c0_2 = arith.constant 0 : index
    %0 = vector.load %arg2[%c0, %c0_0, %c0_1, %c0_2] : memref<1x16x16x32xf32, #tpu.memory_space<vmem>>, vector<1x16x16x32xf32>
    %1 = vector.shape_cast %0 : vector<1x16x16x32xf32> to vector<256x32xf32>
    %c0_3 = arith.constant 0 : index
    %c0_4 = arith.constant 0 : index
    %2 = vector.load %arg3[%c0_3, %c0_4] : memref<32x96xf32, #tpu.memory_space<vmem>>, vector<32x96xf32>
    %cst = arith.constant dense<0.000000e+00> : vector<256x96xf32>
    %3 = tpu.matmul %1, %2, %cst {dimension_numbers = #tpu.dot_dimension_numbers<[1], [0], [0], [1], [0, 0, 1, 1], [], []>} : vector<256x32xf32>, vector<32x96xf32>, vector<256x96xf32> -> vector<256x96xf32>
    %c0_5 = arith.constant 0 : index
    %c0_6 = arith.constant 0 : index
    %4 = vector.load %arg4[%c0_5, %c0_6] : memref<1x96xf32, #tpu.memory_space<vmem>>, vector<1x96xf32>
    %5 = vector.broadcast %4 : vector<1x96xf32> to vector<256x96xf32>
    %6 = arith.addf %3, %5 : vector<256x96xf32>
    %cst_7 = arith.constant 0.000000e+00 : f32
    %7 = vector.broadcast %cst_7 : f32 to vector<18x18x96xf32>
    %c0_8 = arith.constant 0 : index
    %c0_9 = arith.constant 0 : index
    %c0_10 = arith.constant 0 : index
    %8 = vector.load %arg8[%c0_8, %c0_9, %c0_10] : memref<18x18x96xf32, #tpu.memory_space<vmem>>, vector<18x18x96xf32>
    tpu.vector_store %arg8[%c0_8, %c0_9, %c0_10], %7 {strides = array<i32>} : memref<18x18x96xf32, #tpu.memory_space<vmem>>, vector<18x18x96xf32>,
    %9 = vector.shape_cast %6 : vector<256x96xf32> to vector<16x16x96xf32>
    %c1 = arith.constant 1 : index
    %c1_11 = arith.constant 1 : index
    %c0_12 = arith.constant 0 : index
    %10 = vector.load %arg8[%c1, %c1_11, %c0_12] : memref<18x18x96xf32, #tpu.memory_space<vmem>>, vector<16x16x96xf32>
    tpu.vector_store %arg8[%c1, %c1_11, %c0_12], %9 {strides = array<i32>} : memref<18x18x96xf32, #tpu.memory_space<vmem>>, vector<16x16x96xf32>,
    %cst_13 = arith.constant 0.000000e+00 : f32
    %11 = vector.broadcast %cst_13 : f32 to vector<16x16x96xf32>
    %c0_14 = arith.constant 0 : index
    %c0_15 = arith.constant 0 : index
    %c0_16 = arith.constant 0 : index
    %12 = vector.load %arg5[%c0_14, %c0_15, %c0_16] : memref<3x3x96xf32, #tpu.memory_space<vmem>>, vector<1x1x96xf32>
    %c0_17 = arith.constant 0 : index
    %c0_18 = arith.constant 0 : index
    %c0_19 = arith.constant 0 : index
    %13 = vector.load %arg8[%c0_17, %c0_18, %c0_19] : memref<18x18x96xf32, #tpu.memory_space<vmem>>, vector<16x16x96xf32>
    %14 = vector.broadcast %12 : vector<1x1x96xf32> to vector<16x16x96xf32>
    %15 = arith.mulf %13, %14 : vector<16x16x96xf32>
    %16 = arith.addf %11, %15 : vector<16x16x96xf32>
    %c0_20 = arith.constant 0 : index
    %c1_21 = arith.constant 1 : index
    %c0_22 = arith.constant 0 : index
    %17 = vector.load %arg5[%c0_20, %c1_21, %c0_22] : memref<3x3x96xf32, #tpu.memory_space<vmem>>, vector<1x1x96xf32>
    %c0_23 = arith.constant 0 : index
    %c1_24 = arith.constant 1 : index
    %c0_25 = arith.constant 0 : index
    %18 = vector.load %arg8[%c0_23, %c1_24, %c0_25] : memref<18x18x96xf32, #tpu.memory_space<vmem>>, vector<16x16x96xf32>
    %19 = vector.broadcast %17 : vector<1x1x96xf32> to vector<16x16x96xf32>
    %20 = arith.mulf %18, %19 : vector<16x16x96xf32>
    %21 = arith.addf %16, %20 : vector<16x16x96xf32>
    %c0_26 = arith.constant 0 : index
    %c2 = arith.constant 2 : index
    %c0_27 = arith.constant 0 : index
    %22 = vector.load %arg5[%c0_26, %c2, %c0_27] : memref<3x3x96xf32, #tpu.memory_space<vmem>>, vector<1x1x96xf32>
    %c0_28 = arith.constant 0 : index
    %c2_29 = arith.constant 2 : index
    %c0_30 = arith.constant 0 : index
    %23 = vector.load %arg8[%c0_28, %c2_29, %c0_30] : memref<18x18x96xf32, #tpu.memory_space<vmem>>, vector<16x16x96xf32>
    %24 = vector.broadcast %22 : vector<1x1x96xf32> to vector<16x16x96xf32>
    %25 = arith.mulf %23, %24 : vector<16x16x96xf32>
    %26 = arith.addf %21, %25 : vector<16x16x96xf32>
    %c1_31 = arith.constant 1 : index
    %c0_32 = arith.constant 0 : index
    %c0_33 = arith.constant 0 : index
    %27 = vector.load %arg5[%c1_31, %c0_32, %c0_33] : memref<3x3x96xf32, #tpu.memory_space<vmem>>, vector<1x1x96xf32>
    %c1_34 = arith.constant 1 : index
    %c0_35 = arith.constant 0 : index
    %c0_36 = arith.constant 0 : index
    %28 = vector.load %arg8[%c1_34, %c0_35, %c0_36] : memref<18x18x96xf32, #tpu.memory_space<vmem>>, vector<16x16x96xf32>
    %29 = vector.broadcast %27 : vector<1x1x96xf32> to vector<16x16x96xf32>
    %30 = arith.mulf %28, %29 : vector<16x16x96xf32>
    %31 = arith.addf %26, %30 : vector<16x16x96xf32>
    %c1_37 = arith.constant 1 : index
    %c1_38 = arith.constant 1 : index
    %c0_39 = arith.constant 0 : index
    %32 = vector.load %arg5[%c1_37, %c1_38, %c0_39] : memref<3x3x96xf32, #tpu.memory_space<vmem>>, vector<1x1x96xf32>
    %c1_40 = arith.constant 1 : index
    %c1_41 = arith.constant 1 : index
    %c0_42 = arith.constant 0 : index
    %33 = vector.load %arg8[%c1_40, %c1_41, %c0_42] : memref<18x18x96xf32, #tpu.memory_space<vmem>>, vector<16x16x96xf32>
    %34 = vector.broadcast %32 : vector<1x1x96xf32> to vector<16x16x96xf32>
    %35 = arith.mulf %33, %34 : vector<16x16x96xf32>
    %36 = arith.addf %31, %35 : vector<16x16x96xf32>
    %c1_43 = arith.constant 1 : index
    %c2_44 = arith.constant 2 : index
    %c0_45 = arith.constant 0 : index
    %37 = vector.load %arg5[%c1_43, %c2_44, %c0_45] : memref<3x3x96xf32, #tpu.memory_space<vmem>>, vector<1x1x96xf32>
    %c1_46 = arith.constant 1 : index
    %c2_47 = arith.constant 2 : index
    %c0_48 = arith.constant 0 : index
    %38 = vector.load %arg8[%c1_46, %c2_47, %c0_48] : memref<18x18x96xf32, #tpu.memory_space<vmem>>, vector<16x16x96xf32>
    %39 = vector.broadcast %37 : vector<1x1x96xf32> to vector<16x16x96xf32>
    %40 = arith.mulf %38, %39 : vector<16x16x96xf32>
    %41 = arith.addf %36, %40 : vector<16x16x96xf32>
    %c2_49 = arith.constant 2 : index
    %c0_50 = arith.constant 0 : index
    %c0_51 = arith.constant 0 : index
    %42 = vector.load %arg5[%c2_49, %c0_50, %c0_51] : memref<3x3x96xf32, #tpu.memory_space<vmem>>, vector<1x1x96xf32>
    %c2_52 = arith.constant 2 : index
    %c0_53 = arith.constant 0 : index
    %c0_54 = arith.constant 0 : index
    %43 = vector.load %arg8[%c2_52, %c0_53, %c0_54] : memref<18x18x96xf32, #tpu.memory_space<vmem>>, vector<16x16x96xf32>
    %44 = vector.broadcast %42 : vector<1x1x96xf32> to vector<16x16x96xf32>
    %45 = arith.mulf %43, %44 : vector<16x16x96xf32>
    %46 = arith.addf %41, %45 : vector<16x16x96xf32>
    %c2_55 = arith.constant 2 : index
    %c1_56 = arith.constant 1 : index
    %c0_57 = arith.constant 0 : index
    %47 = vector.load %arg5[%c2_55, %c1_56, %c0_57] : memref<3x3x96xf32, #tpu.memory_space<vmem>>, vector<1x1x96xf32>
    %c2_58 = arith.constant 2 : index
    %c1_59 = arith.constant 1 : index
    %c0_60 = arith.constant 0 : index
    %48 = vector.load %arg8[%c2_58, %c1_59, %c0_60] : memref<18x18x96xf32, #tpu.memory_space<vmem>>, vector<16x16x96xf32>
    %49 = vector.broadcast %47 : vector<1x1x96xf32> to vector<16x16x96xf32>
    %50 = arith.mulf %48, %49 : vector<16x16x96xf32>
    %51 = arith.addf %46, %50 : vector<16x16x96xf32>
    %c2_61 = arith.constant 2 : index
    %c2_62 = arith.constant 2 : index
    %c0_63 = arith.constant 0 : index
    %52 = vector.load %arg5[%c2_61, %c2_62, %c0_63] : memref<3x3x96xf32, #tpu.memory_space<vmem>>, vector<1x1x96xf32>
    %c2_64 = arith.constant 2 : index
    %c2_65 = arith.constant 2 : index
    %c0_66 = arith.constant 0 : index
    %53 = vector.load %arg8[%c2_64, %c2_65, %c0_66] : memref<18x18x96xf32, #tpu.memory_space<vmem>>, vector<16x16x96xf32>
    %54 = vector.broadcast %52 : vector<1x1x96xf32> to vector<16x16x96xf32>
    %55 = arith.mulf %53, %54 : vector<16x16x96xf32>
    %56 = arith.addf %51, %55 : vector<16x16x96xf32>
    %c0_67 = arith.constant 0 : index
    %c0_68 = arith.constant 0 : index
    %57 = vector.load %arg6[%c0_67, %c0_68] : memref<1x96xf32, #tpu.memory_space<vmem>>, vector<1x96xf32>
    %58 = vector.shape_cast %57 : vector<1x96xf32> to vector<1x1x96xf32>
    %59 = vector.broadcast %58 : vector<1x1x96xf32> to vector<16x16x96xf32>
    %60 = arith.addf %56, %59 : vector<16x16x96xf32>
    %c0_69 = arith.constant 0 : index
    %c0_70 = arith.constant 0 : index
    %c0_71 = arith.constant 0 : index
    %c0_72 = arith.constant 0 : index
    %61 = vector.load %arg7[%c0_69, %c0_70, %c0_71, %c0_72] : memref<1x16x16x96xf32, #tpu.memory_space<vmem>>, vector<1x16x16x96xf32>
    %62 = vector.shape_cast %61 : vector<1x16x16x96xf32> to vector<16x16x96xf32>
    %63 = vector.shape_cast %60 : vector<16x16x96xf32> to vector<1x16x16x96xf32>
    tpu.vector_store %arg7[%c0_69, %c0_70, %c0_71, %c0_72], %63 {strides = array<i32>} : memref<1x16x16x96xf32, #tpu.memory_space<vmem>>, vector<1x16x16x96xf32>,
    return
  }
  func.func @transform_0(%arg0: i32, %arg1: i32) -> (i32, i32, i32, i32) {
    %c0_i32 = arith.constant 0 : i32
    %c0_i32_0 = arith.constant 0 : i32
    %c0_i32_1 = arith.constant 0 : i32
    %c0_i32_2 = arith.constant 0 : i32
    return %arg0, %c0_i32, %c0_i32_0, %c0_i32_1 : i32, i32, i32, i32
  }
  func.func @transform_1(%arg0: i32, %arg1: i32) -> (i32, i32) {
    %c0_i32 = arith.constant 0 : i32
    %c0_i32_0 = arith.constant 0 : i32
    return %c0_i32, %arg1 : i32, i32
  }
  func.func @transform_2(%arg0: i32, %arg1: i32) -> (i32, i32) {
    %c0_i32 = arith.constant 0 : i32
    %c0_i32_0 = arith.constant 0 : i32
    return %c0_i32, %arg1 : i32, i32
  }
  func.func @transform_3(%arg0: i32, %arg1: i32) -> (i32, i32, i32) {
    %c0_i32 = arith.constant 0 : i32
    %c0_i32_0 = arith.constant 0 : i32
    %c0_i32_1 = arith.constant 0 : i32
    return %c0_i32, %c0_i32_0, %arg1 : i32, i32, i32
  }
  func.func @transform_4(%arg0: i32, %arg1: i32) -> (i32, i32) {
    %c0_i32 = arith.constant 0 : i32
    %c0_i32_0 = arith.constant 0 : i32
    return %c0_i32, %arg1 : i32, i32
  }
  func.func @transform_5(%arg0: i32, %arg1: i32) -> (i32, i32, i32, i32) {
    %c0_i32 = arith.constant 0 : i32
    %c0_i32_0 = arith.constant 0 : i32
    %c0_i32_1 = arith.constant 0 : i32
    return %arg0, %c0_i32, %c0_i32_0, %arg1 : i32, i32, i32, i32
  }
}

</mosaic_0001>

<bundles_post_ra>
// kernel: tpu_custom_call.1
= control target key start
LH: loop header
LB: loop body
LE: loop exit
PB: predicated region body
PF: predicated region fallthrough
CT: control target
= control target key end

     0   :  { %10 = vsyncpa [#allocation4], 0  ;;  %s3679_s0 = inlined_call_operand.hbm [shape: f32[2,16,16,32], index: 0, kind: input, shape index: {}]   ;;  %s3680_s1 = inlined_call_operand.hbm [shape: f32[32,96], index: 1, kind: input, shape index: {}]   ;;  %s3681_s2 = inlined_call_operand.vmem [shape: f32[1,96], index: 2, kind: input, shape index: {}]   ;;  %s3682_s3 = inlined_call_operand.hbm [shape: f32[3,3,96], index: 3, kind: input, shape index: {}]   ;;  %s3683_s4 = inlined_call_operand.vmem [shape: f32[1,96], index: 4, kind: input, shape index: {}]   ;;  %s3684_s5 = inlined_call_operand.hbm [shape: f32[2,16,16,96], index: 5, kind: output, shape index: {}]  }
   0x1   :  { %12 = vsyncpa [#allocation4 + $0x1], 0 }
   0x2   :  { %13 = vsyncpa [#allocation7], 0 }
   0x3   :  { %14 = vsyncpa [#allocation5], 0 }
   0x4   :  { %16 = vsyncpa [#allocation5 + $0x1], 0  ;;  %s2395_s18 = smov 0   ;;  %s2397_s19 = smov 0  }
   0x5   :  { %s2399_s20 = smov 0   ;;  %s2401_s21 = smov 0  }
   0x6   :  { %s2403_s22 = smov 0   ;;  %s2405_s23 = smov 0  }
   0x7 LB: > { %s1910_s24 = sadd.s32 4294967295, %s2352_s23   ;;  %s1911_s25 = sadd.s32 4294967294, %s2352_s23   ;;  %s2352_s23 = sphi %s2405_s23, %s22_s23   ;;  %s2348_s22 = sphi %s2403_s22, %s3768_s22   ;;  %s2344_s21 = sphi %s2401_s21, %s3767_s21   ;;  %s2340_s20 = sphi %s2399_s20, %s3766_s20   ;;  %s2336_s19 = sphi %s2397_s19, %s3765_s19   ;;  %s2332_s18 = sphi %s2395_s18, %s3764_s18  }
   0x8   : > { %p54_p0 = scmp.ne.s32.totalorder %s2336_s19, %s2332_s18  ;;  %p2429_p1 = scmp.eq.s32.totalorder %s1910_s24, 0 }
   0x9   : > { %p2433_p2 = scmp.eq.s32.totalorder %s1910_s24, 1  ;;  %p190_p3 = scmp.eq.s32.totalorder %s1911_s25, 1 }
   0xa   : > { %s3690_s26 = scalar_select %p2429_p1, 1, 0 }
   0xb   : > { %p2439_p4 = por %p2429_p1, %p54_p0  ;;  %p1912_p5 = scmp.ge.s32.totalorder %s2352_s23, 1 }
   0xc   : > { %p2444_p6 = por %p190_p3, %p54_p0  ;;  %p197_p7 = scmp.lt.s32.totalorder %s2352_s23, 3 }
   0xd   : > { %s3692_s28 = scalar_select %p2439_p4, 1, 0 }
   0xe   : > { %s3693_s29 = scalar_select %p2444_p6, 1, 0 }
   0xf   : > { %p2449_p8 = pnand %p1912_p5, %p197_p7  ;;  %s2354_s6 = smov [#allocation6]  }
  0x10   : > { %s211_s7 = sshll.u32 %s2354_s6, 4  ;;  %s2355_s9 = smov [#allocation8]   ;;  %s2453_s7 = int_to_ptr.vmem [resolvable:$true] %s211_s7 }
  0x11   : > { %p2092_p9 = pneg %p2449_p8  ;;  %s232_s10 = sshll.u32 %s2355_s9, 4  ;;  %s2464_s10 = int_to_ptr.vmem [resolvable:$true] %s232_s10 }
  0x12   : > { %s2180_s13 = scalar_lea.hbm %s3680_s1, 512 }
  0x13   : > { %p2460_p11 = pnand %p2092_p9, %p2429_p1  ;;  %p2181_p12 = scmp.ne.s32.totalorder %s3680_s1, %s2180_s13 }
  0x14   : > { %p2187_p5 = scmp.lt.u32.totalorder %s2180_s13, %s3680_s1 }
  0x15   : > { %p2182_p13 = pneg %p2460_p11 }
  0x17   : > { %p2183_p0 = pnand %p2182_p13, %p2181_p12 }
  0x19   : > { %p2184_p3 = pneg %p2183_p0 }
  0x1b   : > { %p2189_p7 = pnand %p2187_p5, %p2184_p3 }
  0x1d   : > { %2192 = shalt.err (!%p2189_p7)
}
  0x1e   : > { %s2193_s24 = scalar_lea.vmem %s2453_s7, 512  ;;  %p2201_p1 = scmp.lt.s32.totalorder %s2453_s7, %s2453_s7 }
  0x1f   : > { %p2194_p9 = scmp.ne.s32.totalorder %s2453_s7, %s2193_s24  ;;  %p2202_p12 = scmp.lt.s32.totalorder %s2193_s24, %s2193_s24 }
  0x21   : > { %p2196_p10 = pnand %p2194_p9, %p2182_p13  ;;  %p2203_p0 = por %p2202_p12, %p2201_p1 }
  0x23   : > { %p2197_p6 = pneg %p2196_p10 }
  0x25   : > { %p2204_p4 = pnand %p2203_p0, %p2197_p6 }
  0x27   : > { %2207 = shalt.err (!%p2204_p4)
}
  0x28   : > { %s3688_s25 = smov 128   ;;  %s2357_s6 = smov 8  }
  0x29   : > { %2095 = dma.hbm_to_vmem [thread:$0]  (!%p2460_p11), %s3680_s1, 512, %s2453_s7, [#allocation7], %s3688_s25, %s3688_s25, %s2357_s6  }
  0x2a   : > { %s2208_s14 = scalar_lea.hbm %s3682_s3, 192 }
  0x2b   : > { %p2209_p1 = scmp.ne.s32.totalorder %s3682_s3, %s2208_s14  ;;  %p2215_p10 = scmp.lt.u32.totalorder %s2208_s14, %s3682_s3 }
  0x2d   : > { %p2211_p4 = pnand %p2209_p1, %p2182_p13 }
  0x2f   : > { %p2212_p6 = pneg %p2211_p4 }
  0x31   : > { %p2217_p3 = pnand %p2215_p10, %p2212_p6 }
  0x33   : > { %2220 = shalt.err (!%p2217_p3)
}
  0x34   : > { %s2221_s7 = scalar_lea.vmem %s2464_s10, 192  ;;  %p2229_p12 = scmp.lt.s32.totalorder %s2464_s10, %s2464_s10 }
  0x35   : > { %p2222_p5 = scmp.ne.s32.totalorder %s2464_s10, %s2221_s7  ;;  %p2230_p0 = scmp.lt.s32.totalorder %s2221_s7, %s2221_s7 }
  0x37   : > { %p2224_p7 = pnand %p2222_p5, %p2182_p13  ;;  %p2231_p1 = por %p2230_p0, %p2229_p12 }
  0x39   : > { %p2225_p9 = pneg %p2224_p7 }
  0x3b   : > { %p2232_p4 = pnand %p2231_p1, %p2225_p9 }
  0x3d   : > { %2235 = shalt.err (!%p2232_p4)
}
  0x3e   : > { %s2358_s9 = smov 64   ;;  %s2359_s11 = smov 4  }
  0x3f   : > { %2098 = dma.hbm_to_vmem [thread:$0]  (!%p2460_p11), %s3682_s3, 192, %s2464_s10, [#allocation7], %s2358_s9, %s2358_s9, %s2359_s11  }
  0x40   : > { %s34_s14 = sadd.s32 1, %s2348_s22  ;;  %s41_s15 = sadd.s32 1, %s2340_s20 }
  0x41   : > { %p36_p13 = scmp.ge.s32.totalorder %s34_s14, 2  ;;  %p48_p6 = scmp.ne.s32.totalorder %s2340_s20, %s2336_s19 }
  0x42   : > { %p49_p10 = scmp.eq.s32.totalorder %s2352_s23, 0  ;;  %p2109_p3 = scmp.lt.s32.totalorder %s2352_s23, 2 }
  0x43   : > { %s3770_s14 = smov (%p36_p13, %s34_s14), 0  ;;  %p2531_p7 = por %p2433_p2, %p48_p6 }
  0x44   : > { %p50_p5 = por %p49_p10, %p48_p6  ;;  %s38_s8 = ssub.s32 %s2348_s22, %s3770_s14 }
  0x45   : > { %s3696_s16 = scalar_select %p2531_p7, 1, 0 }
  0x46   : > { %s252_s17 = sand.u32 1, %s2340_s20   ;;  %p39_p9 = scmp.eq.s32.totalorder %s38_s8, 0 }
  0x47   : > { %s1918_s10 = sshll.u32 %s252_s17, 8  ;;  %s1974_s24 = sshll.u32 %s2348_s22, 12 }
  0x48   : > { %s2540_s7 = scalar_select %p39_p9, %s2340_s20, %s41_s15  }
  0x49   : > { %s2545_s12 = scalar_lea.hbm %s3679_s0, %s1974_s24  ;;  %s256_s27 = scalar_lea.vmem [#allocation3], %s1918_s10 }
  0x4a   : > { %s263_s13 = sshll.u32 %s256_s27, 4  ;;  %p2549_p2 = pnand %p2109_p3, %p50_p5  ;;  %s2553_s13 = int_to_ptr.vmem [resolvable:$true] %s263_s13 }
  0x4b   : > { %s2555_s15 = scalar_lea.sflag [#allocation4], %s252_s17  ;;  %s2236_s8 = scalar_lea.hbm %s2545_s12, 4096 }
  0x4c   : > { %p2237_p11 = scmp.ne.s32.totalorder %s2545_s12, %s2236_s8  ;;  %p2238_p12 = pneg %p2549_p2 }
  0x4d   : > { %s2241_s9 = scalar_lea.hbm %s3679_s0, 8192  ;;  %p2242_p4 = scmp.lt.u32.totalorder %s2545_s12, %s3679_s0 }
  0x4e   : > { %p2239_p0 = pnand %p2238_p12, %p2237_p11  ;;  %p2243_p13 = scmp.lt.u32.totalorder %s2241_s9, %s2236_s8 }
  0x4f   : > { %p2245_p10 = scmp.lt.u32.totalorder %s2236_s8, %s2545_s12 }
  0x50   : > { %p2240_p1 = pneg %p2239_p0  ;;  %p2244_p6 = por %p2243_p13, %p2242_p4 }
  0x52   : > { %p2246_p3 = por %p2245_p10, %p2244_p6 }
  0x54   : > { %p2247_p5 = pnand %p2246_p3, %p2240_p1 }
  0x56   : > { %2250 = shalt.err (!%p2247_p5)
}
  0x57   : > { %s2251_s17 = scalar_lea.vmem %s2553_s13, 4096  ;;  %s2360_s10 = smov [#allocation3]  }
  0x58   : > { %p2252_p9 = scmp.ne.s32.totalorder %s2553_s13, %s2251_s17  ;;  %s2256_s24 = sshll.u32 %s2360_s10, 4  ;;  %s2257_s24 = int_to_ptr.vmem [resolvable:$false] %s2256_s24 }
  0x59   : > { %s2258_s11 = scalar_lea.vmem %s2257_s24, 8192  ;;  %p2259_p7 = scmp.lt.s32.totalorder %s2553_s13, %s2257_s24 }
  0x5a   : > { %p2254_p11 = pnand %p2252_p9, %p2238_p12  ;;  %p2260_p4 = scmp.lt.s32.totalorder %s2258_s11, %s2251_s17 }
  0x5c   : > { %p2255_p0 = pneg %p2254_p11  ;;  %p2261_p13 = por %p2260_p4, %p2259_p7 }
  0x5e   : > { %p2262_p6 = pnand %p2261_p13, %p2255_p0 }
  0x60   : > { %2265 = shalt.err (!%p2262_p6)
}
  0x61   : > { %s3698_s8 = smov 128   ;;  %275 = sbr.rel (%p2449_p8) target bundleno = 517 (0x205), region = 40 }
  0x62   : > { %2102 = dma.hbm_to_vmem [thread:$0]  (!%p2549_p2), %s2545_s12, 4096, %s2553_s13, %s2555_s15, %s3698_s8, %s3698_s8, %s2357_s6  }
  0x68   : > { %s2589_s9 = sand.u32 1, %s2336_s19   ;;  %p3699_p7 = scmp.ne.s32.totalorder %s3692_s28, 0 }
  0x69   : > { %s1922_s27 = sshll.u32 %s2589_s9, 8  ;;  %s278_s17 = scalar_lea.sflag [#allocation4], %s2589_s9 }
  0x6a   : > { %s2595_s25 = scalar_lea.vmem [#allocation3], %s1922_s27 }
  0x6b   : > { %2319 = dma.done.wait (%p3699_p7), %s278_s17, 4096  }
  0x6c   : > { %2321 = vsyncadd (%p3699_p7), %s278_s17, 4294963200  ;;  %p3700_p2 = scmp.ne.s32.totalorder %s3690_s26, 0 }
  0x6e   : > { %2323 = dma.done.wait (%p3700_p2), [#allocation7], 704  }
  0x6f   : > { %2325 = vsyncadd (%p3700_p2), [#allocation7], 4294966592  ;;  %vm371_vm0 = vcmask 261120   ;;  %v360_v0 = vld [vmem:[#allocation6] sm:$0xff]  ;;  %v361_v1 = vld [vmem:[#allocation6 + $0x8] sm:$0xff]  ;;  %vm693_vm1 = vcmask 785408  }
  0x70   : > { %v362_v2 = vld [vmem:[#allocation6 + $0x10] sm:$0xff]  ;;  %v2068_v3 = vpack.c.bf16 %v361_v1, %v360_v0  ;;  %v363_v4 = vld [vmem:[#allocation6 + $0x18] sm:$0xff]  ;;  %v328_v5 = vld [vmem:[%s2595_s25] sm:$0xff]  ;;  %vm696_vm2 = vcmask 779264   ;;  %v2361_v38 = vmov 0.0   ;;  %s2947_s12 = scalar_lea.vmem [#allocation9], %s1922_s27 }
  0x71   : > { %v344_v6 = vld [vmem:[%s2595_s25 + $0x80] sm:$0xff]  ;;  %v2072_v7 = vpack.c.bf16 %v363_v4, %v362_v2  ;;  %2020 = vmatprep.mubr.msk.f32.mxu0 %vm371_vm0, %v328_v5  ;;  %v329_v8 = vld [vmem:[%s2595_s25 + $0x8] sm:$0xff]  ;;  %v330_v10 = vld [vmem:[%s2595_s25 + $0x10] sm:$0xff]  ;;  %699 = vst.msk [vmem:[#allocation2 + $0x20] sm:$0xff] %vm693_vm1, %v2361_v38  ;;  %s1975_s10 = sshll.u32 %s2344_s21, 12  ;;  %s1780_s24 = sshll.u32 %s2947_s12, 4  ;;  %s3620_s24 = int_to_ptr.vmem [resolvable:$true] %s1780_s24 }
  0x72   : > { %2044 = vmatprep.mubr.msk.f32.mxu1 %vm371_vm0, %v344_v6  ;;  %2069 = vmatprep.subr.bf16.mxu0 %v2068_v3  ;;  %v345_v9 = vld [vmem:[%s2595_s25 + $0x88] sm:$0xff]  ;;  %v346_v11 = vld [vmem:[%s2595_s25 + $0x90] sm:$0xff]  ;;  %v331_v12 = vld [vmem:[%s2595_s25 + $0x18] sm:$0xff]  ;;  %700 = vst.msk [vmem:[#allocation2 + $0x28] sm:$0x3] %vm696_vm2, %v2361_v38  ;;  %s3618_s27 = scalar_lea.hbm %s3684_s5, %s1975_s10  ;;  %s1766_s21 = scalar_lea.sflag [#allocation5], %s2589_s9 }
  0x73   : > { %2076 = vmatprep.subr.bf16.mxu1 %v2068_v3  ;;  %2071 = vmatpush3.bf16.msra.mxu0 %v2068_v3  ;;  %v347_v13 = vld [vmem:[%s2595_s25 + $0x98] sm:$0xff]  ;;  %v332_v14 = vld [vmem:[%s2595_s25 + $0x20] sm:$0xff]  ;;  %v333_v16 = vld [vmem:[%s2595_s25 + $0x28] sm:$0xff]  ;;  %694 = vst.msk [vmem:[#allocation2] sm:$0xff] %vm693_vm1, %v2361_v38  ;;  %s2266_s17 = scalar_lea.vmem %s3620_s24, 4096  ;;  %p3761_p12 = scmp.ne.s32.totalorder %s3696_s16, 0 }
  0x74   : > { %2078 = vmatpush3.bf16.msra.mxu1 %v2068_v3  ;;  %2073 = vmatprep.subr.bf16.mxu0 %v2072_v7  ;;  %v348_v15 = vld [vmem:[%s2595_s25 + $0xa0] sm:$0xff]  ;;  %v349_v17 = vld [vmem:[%s2595_s25 + $0xa8] sm:$0xff]  ;;  %v334_v18 = vld [vmem:[%s2595_s25 + $0x30] sm:$0xff]  ;;  %695 = vst.msk [vmem:[#allocation2 + $0x8] sm:$0xff] %vm693_vm1, %v2361_v38  ;;  %p2267_p8 = scmp.ne.s32.totalorder %s3620_s24, %s2266_s17 }
  0x75   : > { %2077 = vmatprep.subr.bf16.mxu1 %v2072_v7  ;;  %v350_v19 = vld [vmem:[%s2595_s25 + $0xb0] sm:$0xff]  ;;  %v335_v20 = vld [vmem:[%s2595_s25 + $0x38] sm:$0xff]  ;;  %v336_v22 = vld [vmem:[%s2595_s25 + $0x40] sm:$0xff]  ;;  %697 = vst.msk [vmem:[#allocation2 + $0x10] sm:$0x3] %vm696_vm2, %v2361_v38 }
  0x76   : > { %v351_v21 = vld [vmem:[%s2595_s25 + $0xb8] sm:$0xff]  ;;  %v352_v23 = vld [vmem:[%s2595_s25 + $0xc0] sm:$0xff]  ;;  %v337_v24 = vld [vmem:[%s2595_s25 + $0x48] sm:$0xff]  ;;  %698 = vst.msk [vmem:[#allocation2 + $0x18] sm:$0xff] %vm693_vm1, %v2361_v38  ;;  %p2268_p1 = pnand %p2267_p8, %p3761_p12 }
  0x77   : > { %2075 = vmatpush3.bf16.msra.mxu0 %v2072_v7  ;;  %v353_v25 = vld [vmem:[%s2595_s25 + $0xc8] sm:$0xff]  ;;  %v338_v26 = vld [vmem:[%s2595_s25 + $0x50] sm:$0xff]  ;;  %v339_v28 = vld [vmem:[%s2595_s25 + $0x58] sm:$0xff]  ;;  %701 = vst.msk [vmem:[#allocation2 + $0x30] sm:$0xff] %vm693_vm1, %v2361_v38 }
  0x78   : > { %2079 = vmatpush3.bf16.msra.mxu1 %v2072_v7  ;;  %v354_v27 = vld [vmem:[%s2595_s25 + $0xd0] sm:$0xff]  ;;  %v355_v29 = vld [vmem:[%s2595_s25 + $0xd8] sm:$0xff]  ;;  %v340_v30 = vld [vmem:[%s2595_s25 + $0x60] sm:$0xff]  ;;  %702 = vst.msk [vmem:[#allocation2 + $0x38] sm:$0xff] %vm693_vm1, %v2361_v38  ;;  %p2269_p10 = pneg %p2268_p1 }
  0x79   : > { %v356_v31 = vld [vmem:[%s2595_s25 + $0xe0] sm:$0xff]  ;;  %v341_v32 = vld [vmem:[%s2595_s25 + $0x68] sm:$0xff]  ;;  %v342_v34 = vld [vmem:[%s2595_s25 + $0x70] sm:$0xff]  ;;  %703 = vst.msk [vmem:[#allocation2 + $0x40] sm:$0x3] %vm696_vm2, %v2361_v38 }
  0x7a   : > { %2021 = vmatmul.mubr.msk.f32.vlgmr.msra.gmra.mrb[0].mxu0 %vm371_vm0, %v329_v8  ;;  %v357_v33 = vld [vmem:[%s2595_s25 + $0xe8] sm:$0xff]  ;;  %v358_v35 = vld [vmem:[%s2595_s25 + $0xf0] sm:$0xff]  ;;  %v343_v36 = vld [vmem:[%s2595_s25 + $0x78] sm:$0xff]  ;;  %704 = vst.msk [vmem:[#allocation2 + $0x48] sm:$0xff] %vm693_vm1, %v2361_v38 }
  0x7b   : > { %2045 = vmatmul.mubr.msk.f32.vlgmr.msra.gmra.mrb[0].mxu1 %vm371_vm0, %v345_v9  ;;  %2023 = vmatprep.mubr.msk.f32.mxu0 %vm371_vm0, %v330_v10  ;;  %v359_v37 = vld [vmem:[%s2595_s25 + $0xf8] sm:$0xff]  ;;  %705 = vst.msk [vmem:[#allocation2 + $0x50] sm:$0xff] %vm693_vm1, %v2361_v38  ;;  %707 = vst.msk [vmem:[#allocation2 + $0x60] sm:$0xff] %vm693_vm1, %v2361_v38  ;;  %v2726_v39 = vld [vmem:[%s3681_s2] ss:$0 sm:$0xff]  ;;  %s2362_s25 = smov [#allocation9]  }
  0x7c   : > { %2047 = vmatprep.mubr.msk.f32.mxu1 %vm371_vm0, %v346_v11  ;;  %706 = vst.msk [vmem:[#allocation2 + $0x58] sm:$0x3] %vm696_vm2, %v2361_v38  ;;  %709 = vst.msk [vmem:[#allocation2 + $0x70] sm:$0x3] %vm696_vm2, %v2361_v38  ;;  %v2728_v40 = vld [vmem:[#allocation8 + $0x1] ss:$0 sm:$0xff] }
  0x7d   : > { %708 = vst.msk [vmem:[#allocation2 + $0x68] sm:$0xff] %vm693_vm1, %v2361_v38  ;;  %710 = vst.msk [vmem:[#allocation2 + $0x78] sm:$0xff] %vm693_vm1, %v2361_v38  ;;  %v2730_v41 = vld [vmem:[#allocation8] ss:$0 sm:$0xff]  ;;  %v783_v42 = vld [vmem:[#allocation2] sm:$0xff]  ;;  %s2270_s26 = sshll.u32 %s2362_s25, 4  ;;  %s2271_s26 = int_to_ptr.vmem [resolvable:$false] %s2270_s26 }
  0x7e   : > { %2024 = vmatmul.mubr.msk.f32.gmra.mrb[2].mxu0 %vm371_vm0, %v331_v12  ;;  %711 = vst.msk [vmem:[#allocation2 + $0x80] sm:$0xff] %vm693_vm1, %v2361_v38  ;;  %713 = vst.msk [vmem:[#allocation2 + $0x90] sm:$0xff] %vm693_vm1, %v2361_v38  ;;  %v784_v45 = vld [vmem:[#allocation2 + $0x8] sm:$0xff]  ;;  %v819_v54 = vmul.f32 %v2730_v41, %v783_v42  ;;  %v2742_v58 = vld [vmem:[#allocation8 + $0x2] ss:$0 sm:$0xff]  ;;  %s2272_s28 = scalar_lea.vmem %s2271_s26, 8192  ;;  %p2273_p3 = scmp.lt.s32.totalorder %s3620_s24, %s2271_s26 }
  0x7f   : > { %2048 = vmatmul.mubr.msk.f32.gmra.mrb[2].mxu1 %vm371_vm0, %v347_v13  ;;  %2026 = vmatprep.mubr.msk.f32.mxu0 %vm371_vm0, %v332_v14  ;;  %712 = vst.msk [vmem:[#allocation2 + $0x88] sm:$0x3] %vm696_vm2, %v2361_v38  ;;  %715 = vst.msk [vmem:[#allocation2 + $0xa0] sm:$0x3] %vm696_vm2, %v2361_v38  ;;  %v884_v46 = vld [vmem:[#allocation2 + $0x1] sm:$0xff]  ;;  %v885_v47 = vld [vmem:[#allocation2 + $0x9] sm:$0xff]  ;;  %v820_v55 = vmul.f32 %v2730_v41, %v784_v45  ;;  %p2274_p5 = scmp.lt.s32.totalorder %s2272_s28, %s2266_s17 }
  0x80   : > { %2050 = vmatprep.mubr.msk.f32.mxu1 %vm371_vm0, %v348_v15  ;;  %714 = vst.msk [vmem:[#allocation2 + $0x98] sm:$0xff] %vm693_vm1, %v2361_v38  ;;  %716 = vst.msk [vmem:[#allocation2 + $0xa8] sm:$0xff] %vm693_vm1, %v2361_v38  ;;  %v920_v56 = vmul.f32 %v2728_v40, %v884_v46  ;;  %v921_v57 = vmul.f32 %v2728_v40, %v885_v47  ;;  %v985_v59 = vld [vmem:[#allocation2 + $0x2] sm:$0xff]  ;;  %v986_v60 = vld [vmem:[#allocation2 + $0xa] sm:$0xff] }
  0x81   : > { %717 = vst.msk [vmem:[#allocation2 + $0xb0] sm:$0xff] %vm693_vm1, %v2361_v38  ;;  %719 = vst.msk [vmem:[#allocation2 + $0xc0] sm:$0xff] %vm693_vm1, %v2361_v38  ;;  %v1021_v7 = vmul.f32 %v2742_v58, %v985_v59  ;;  %v1022_v8 = vmul.f32 %v2742_v58, %v986_v60  ;;  %v2754_v9 = vld [vmem:[#allocation8 + $0x5] ss:$0 sm:$0xff]  ;;  %v2758_v12 = vld [vmem:[#allocation8 + $0x6] ss:$0 sm:$0xff]  ;;  %p2275_p9 = por %p2274_p5, %p2273_p3 }
  0x82   : > { %2027 = vmatmul.mubr.msk.f32.gmra.mrb[4].mxu0 %vm371_vm0, %v333_v16  ;;  %718 = vst.msk [vmem:[#allocation2 + $0xb8] sm:$0x3] %vm696_vm2, %v2361_v38  ;;  %721 = vst.msk [vmem:[#allocation2 + $0xd0] sm:$0x3] %vm696_vm2, %v2361_v38  ;;  %v952_v5 = vadd.f32 %v920_v56, %v819_v54  ;;  %v953_v6 = vadd.f32 %v921_v57, %v820_v55  ;;  %v2760_v13 = vld [vmem:[#allocation8 + $0x4] ss:$0 sm:$0xff] }
  0x83   : > { %2051 = vmatmul.mubr.msk.f32.gmra.mrb[4].mxu1 %vm371_vm0, %v349_v17  ;;  %2029 = vmatprep.mubr.msk.f32.mxu0 %vm371_vm0, %v334_v18  ;;  %720 = vst.msk [vmem:[#allocation2 + $0xc8] sm:$0xff] %vm693_vm1, %v2361_v38  ;;  %722 = vst.msk [vmem:[#allocation2 + $0xd8] sm:$0xff] %vm693_vm1, %v2361_v38  ;;  %p2276_p11 = pnand %p2275_p9, %p2269_p10 }
  0x84   : > { %2053 = vmatprep.mubr.msk.f32.mxu1 %vm371_vm0, %v350_v19  ;;  %723 = vst.msk [vmem:[#allocation2 + $0xe0] sm:$0xff] %vm693_vm1, %v2361_v38  ;;  %725 = vst.msk [vmem:[#allocation2 + $0xf0] sm:$0xff] %vm693_vm1, %v2361_v38 }
  0x85   : > { %724 = vst.msk [vmem:[#allocation2 + $0xe8] sm:$0x3] %vm696_vm2, %v2361_v38  ;;  %727 = vst.msk [vmem:[#allocation2 + $0x100] sm:$0x3] %vm696_vm2, %v2361_v38 }
  0x86   : > { %2030 = vmatmul.mubr.msk.f32.gmra.mrb[6].mxu0 %vm371_vm0, %v335_v20  ;;  %726 = vst.msk [vmem:[#allocation2 + $0xf8] sm:$0xff] %vm693_vm1, %v2361_v38  ;;  %728 = vst.msk [vmem:[#allocation2 + $0x108] sm:$0xff] %vm693_vm1, %v2361_v38 }
  0x87   : > { %2054 = vmatmul.mubr.msk.f32.gmra.mrb[6].mxu1 %vm371_vm0, %v351_v21  ;;  %2032 = vmatprep.mubr.msk.f32.mxu0 %vm371_vm0, %v336_v22  ;;  %729 = vst.msk [vmem:[#allocation2 + $0x110] sm:$0xff] %vm693_vm1, %v2361_v38  ;;  %731 = vst.msk [vmem:[#allocation2 + $0x120] sm:$0xff] %vm693_vm1, %v2361_v38 }
  0x88   : > { %2056 = vmatprep.mubr.msk.f32.mxu1 %vm371_vm0, %v352_v23  ;;  %730 = vst.msk [vmem:[#allocation2 + $0x118] sm:$0x3] %vm696_vm2, %v2361_v38  ;;  %733 = vst.msk [vmem:[#allocation2 + $0x130] sm:$0x3] %vm696_vm2, %v2361_v38 }
  0x89   : > { %732 = vst.msk [vmem:[#allocation2 + $0x128] sm:$0xff] %vm693_vm1, %v2361_v38  ;;  %734 = vst.msk [vmem:[#allocation2 + $0x138] sm:$0xff] %vm693_vm1, %v2361_v38 }
  0x8a   : > { %2033 = vmatmul.mubr.msk.f32.gmra.mrb[8].mxu0 %vm371_vm0, %v337_v24  ;;  %735 = vst.msk [vmem:[#allocation2 + $0x140] sm:$0xff] %vm693_vm1, %v2361_v38  ;;  %737 = vst.msk [vmem:[#allocation2 + $0x150] sm:$0xff] %vm693_vm1, %v2361_v38 }
  0x8b   : > { %2057 = vmatmul.mubr.msk.f32.gmra.mrb[8].mxu1 %vm371_vm0, %v353_v25  ;;  %2035 = vmatprep.mubr.msk.f32.mxu0 %vm371_vm0, %v338_v26  ;;  %736 = vst.msk [vmem:[#allocation2 + $0x148] sm:$0x3] %vm696_vm2, %v2361_v38  ;;  %739 = vst.msk [vmem:[#allocation2 + $0x160] sm:$0x3] %vm696_vm2, %v2361_v38  ;;  %v1053_v26 = vadd.f32 %v1021_v7, %v952_v5 }
  0x8c   : > { %2059 = vmatprep.mubr.msk.f32.mxu1 %vm371_vm0, %v354_v27  ;;  %738 = vst.msk [vmem:[#allocation2 + $0x158] sm:$0xff] %vm693_vm1, %v2361_v38  ;;  %740 = vst.msk [vmem:[#allocation2 + $0x168] sm:$0xff] %vm693_vm1, %v2361_v38  ;;  %v1054_v27 = vadd.f32 %v1022_v8, %v953_v6  ;;  %v2820_v6 = vld [vmem:[#allocation8 + $0x8] ss:$0 sm:$0xff] }
  0x8d   : > { %741 = vst.msk [vmem:[#allocation2 + $0x170] sm:$0xff] %vm693_vm1, %v2361_v38  ;;  %743 = vst.msk [vmem:[#allocation2 + $0x180] sm:$0xff] %vm693_vm1, %v2361_v38 }
  0x8e   : > { %2036 = vmatmul.mubr.msk.f32.gmra.mrb[10].mxu0 %vm371_vm0, %v339_v28  ;;  %742 = vst.msk [vmem:[#allocation2 + $0x178] sm:$0x3] %vm696_vm2, %v2361_v38  ;;  %745 = vst.msk [vmem:[#allocation2 + $0x190] sm:$0x3] %vm696_vm2, %v2361_v38 }
  0x8f   : > { %2060 = vmatmul.mubr.msk.f32.gmra.mrb[10].mxu1 %vm371_vm0, %v355_v29  ;;  %2038 = vmatprep.mubr.msk.f32.mxu0 %vm371_vm0, %v340_v30  ;;  %744 = vst.msk [vmem:[#allocation2 + $0x188] sm:$0xff] %vm693_vm1, %v2361_v38  ;;  %746 = vst.msk [vmem:[#allocation2 + $0x198] sm:$0xff] %vm693_vm1, %v2361_v38 }
  0x90   : > { %2062 = vmatprep.mubr.msk.f32.mxu1 %vm371_vm0, %v356_v31  ;;  %747 = vst.msk [vmem:[#allocation2 + $0x1a0] sm:$0xff] %vm693_vm1, %v2361_v38 }
  0x91   : > { %748 = vst.msk [vmem:[#allocation2 + $0x1a8] sm:$0x3] %vm696_vm2, %v2361_v38 }
  0x92   : > { %2039 = vmatmul.mubr.msk.f32.gmra.mrb[12].mxu0 %vm371_vm0, %v341_v32  ;;  %v2776_v32 = vld [vmem:[#allocation8 + $0x9] ss:$0 sm:$0xff] }
  0x93   : > { %2063 = vmatmul.mubr.msk.f32.gmra.mrb[12].mxu1 %vm371_vm0, %v357_v33  ;;  %2041 = vmatprep.mubr.msk.f32.mxu0 %vm371_vm0, %v342_v34 }
  0x94   : > { %2065 = vmatprep.mubr.msk.f32.mxu1 %vm371_vm0, %v358_v35 }
  0x96   : > { %2042 = vmatmul.mubr.msk.f32.gmra.mrb[14].mxu0 %vm371_vm0, %v343_v36 }
  0x97   : > { %2066 = vmatmul.mubr.msk.f32.gmra.mrb[14].mxu1 %vm371_vm0, %v359_v37 }
 0x14d   : > { %v2022_v43 = vpop.f32.mrb[0].mxu0 }
 0x14e   : > { %v2046_v44 = vpop.f32.mrb[0].mxu1  ;;  %v540_v48 = vadd.f32 %v2022_v43, %v2726_v39  ;;  %v534_v50 = vpop.f32.mrb[1].mxu0 }
 0x14f   : > { %v620_v49 = vadd.f32 %v2046_v44, %v2726_v39  ;;  %v614_v51 = vpop.f32.mrb[1].mxu1  ;;  %v535_v52 = vadd.f32 %v2726_v39, %v534_v50 }
 0x150   : > { %v615_v53 = vadd.f32 %v2726_v39, %v614_v51  ;;  %751 = vst.msk [vmem:[#allocation2 + $0x21] sm:$0xff] %vm693_vm1, %v540_v48  ;;  %v2797_v48 = vld [vmem:[#allocation8 + $0xa] ss:$0 sm:$0xff] }
 0x151   : > { %767 = vst.msk [vmem:[#allocation2 + $0xe1] sm:$0xff] %vm693_vm1, %v620_v49  ;;  %750 = vst.msk [vmem:[#allocation2 + $0x19] sm:$0xff] %vm693_vm1, %v535_v52  ;;  %v2025_v61 = vpop.f32.mrb[2].mxu0 }
 0x152   : > { %766 = vst.msk [vmem:[#allocation2 + $0xd9] sm:$0xff] %vm693_vm1, %v615_v53  ;;  %v2049_v62 = vpop.f32.mrb[2].mxu1  ;;  %v550_v63 = vadd.f32 %v2025_v61, %v2726_v39  ;;  %v544_v1 = vpop.f32.mrb[3].mxu0 }
 0x153   : > { %v630_v0 = vadd.f32 %v2049_v62, %v2726_v39  ;;  %v624_v2 = vpop.f32.mrb[3].mxu1  ;;  %v545_v3 = vadd.f32 %v2726_v39, %v544_v1 }
 0x154   : > { %v625_v4 = vadd.f32 %v2726_v39, %v624_v2  ;;  %753 = vst.msk [vmem:[#allocation2 + $0x39] sm:$0xff] %vm693_vm1, %v550_v63 }
 0x155   : > { %769 = vst.msk [vmem:[#allocation2 + $0xf9] sm:$0xff] %vm693_vm1, %v630_v0  ;;  %752 = vst.msk [vmem:[#allocation2 + $0x31] sm:$0xff] %vm693_vm1, %v545_v3  ;;  %v2028_v10 = vpop.f32.mrb[4].mxu0 }
 0x156   : > { %768 = vst.msk [vmem:[#allocation2 + $0xf1] sm:$0xff] %vm693_vm1, %v625_v4  ;;  %v2052_v11 = vpop.f32.mrb[4].mxu1  ;;  %v560_v14 = vadd.f32 %v2028_v10, %v2726_v39  ;;  %v554_v16 = vpop.f32.mrb[5].mxu0 }
 0x157   : > { %v640_v15 = vadd.f32 %v2052_v11, %v2726_v39  ;;  %v634_v17 = vpop.f32.mrb[5].mxu1  ;;  %v887_v18 = vld [vmem:[#allocation2 + $0x21] sm:$0xff]  ;;  %v555_v21 = vadd.f32 %v2726_v39, %v554_v16 }
 0x158   : > { %v988_v19 = vld [vmem:[#allocation2 + $0x22] sm:$0xff]  ;;  %v635_v22 = vadd.f32 %v2726_v39, %v634_v17  ;;  %v785_v24 = vld [vmem:[#allocation2 + $0x18] sm:$0xff]  ;;  %755 = vst.msk [vmem:[#allocation2 + $0x51] sm:$0xff] %vm693_vm1, %v560_v14  ;;  %v923_v28 = vmul.f32 %v2728_v40, %v887_v18  ;;  %v1225_v30 = vmul.f32 %v2754_v9, %v887_v18 }
 0x159   : > { %v903_v20 = vld [vmem:[#allocation2 + $0xe1] sm:$0xff]  ;;  %771 = vst.msk [vmem:[#allocation2 + $0x111] sm:$0xff] %vm693_vm1, %v640_v15  ;;  %v2770_v29 = vmul.f32 %v2742_v58, %v988_v19  ;;  %v2774_v31 = vmul.f32 %v2758_v12, %v988_v19  ;;  %v886_v33 = vld [vmem:[#allocation2 + $0x19] sm:$0xff]  ;;  %754 = vst.msk [vmem:[#allocation2 + $0x49] sm:$0xff] %vm693_vm1, %v555_v21  ;;  %v2780_v35 = vpop.f32.mrb[6].mxu0  ;;  %v821_v42 = vmul.f32 %v2730_v41, %v785_v24 }
 0x15a   : > { %v1004_v23 = vld [vmem:[#allocation2 + $0xe2] sm:$0xff]  ;;  %v801_v34 = vld [vmem:[#allocation2 + $0xd8] sm:$0xff]  ;;  %770 = vst.msk [vmem:[#allocation2 + $0x109] sm:$0xff] %vm693_vm1, %v635_v22  ;;  %v2782_v36 = vpop.f32.mrb[6].mxu1  ;;  %v939_v37 = vmul.f32 %v2728_v40, %v903_v20  ;;  %v2790_v45 = vpop.f32.mrb[7].mxu0  ;;  %v2795_v47 = vmul.f32 %v2754_v9, %v903_v20  ;;  %v922_v49 = vmul.f32 %v2728_v40, %v886_v33  ;;  %v1123_v51 = vmul.f32 %v2760_v13, %v785_v24 }
 0x15b   : > { %v786_v25 = vld [vmem:[#allocation2 + $0x20] sm:$0xff]  ;;  %v2786_v38 = vmul.f32 %v2742_v58, %v1004_v23  ;;  %v2792_v46 = vpop.f32.mrb[7].mxu1  ;;  %v2803_v54 = vmul.f32 %v2758_v12, %v1004_v23  ;;  %v2806_v55 = vmul.f32 %v2776_v32, %v903_v20  ;;  %v1224_v56 = vmul.f32 %v2754_v9, %v886_v33 }
 0x15c   : > { %v822_v43 = vmul.f32 %v2730_v41, %v786_v25  ;;  %v802_v44 = vld [vmem:[#allocation2 + $0xe0] sm:$0xff]  ;;  %3701 = vst [vmem:[#allocation13_spill] sm:$0xff] %v2795_v47  ;;  %v1124_v52 = vmul.f32 %v2760_v13, %v786_v25  ;;  %v837_v57 = vmul.f32 %v2730_v41, %v801_v34  ;;  %v954_v60 = vadd.f32 %v922_v49, %v821_v42  ;;  %v787_v49 = vld [vmem:[#allocation2 + $0x30] sm:$0xff] }
 0x15d   : > { %v987_v50 = vld [vmem:[#allocation2 + $0x1a] sm:$0xff]  ;;  %3702 = vst [vmem:[#allocation14_spill] sm:$0xff] %v2803_v54  ;;  %3703 = vst [vmem:[#allocation15_spill] sm:$0xff] %v2806_v55  ;;  %v1155_v61 = vadd.f32 %v1123_v51, %v1053_v26  ;;  %v838_v63 = vmul.f32 %v2730_v41, %v802_v44  ;;  %v2811_v0 = vpop.f32.mrb[8].mxu0  ;;  %v2816_v2 = vmul.f32 %v2797_v48, %v1004_v23 }
 0x15e   : > { %v902_v53 = vld [vmem:[#allocation2 + $0xd9] sm:$0xff]  ;;  %v1156_v62 = vadd.f32 %v1124_v52, %v1054_v27  ;;  %v2813_v1 = vpop.f32.mrb[8].mxu1  ;;  %v955_v3 = vadd.f32 %v923_v28, %v822_v43  ;;  %v1023_v4 = vmul.f32 %v2742_v58, %v987_v50  ;;  %v2822_v7 = vpop.f32.mrb[9].mxu0  ;;  %v1325_v11 = vmul.f32 %v2758_v12, %v987_v50 }
 0x15f   : > { %v1003_v59 = vld [vmem:[#allocation2 + $0xda] sm:$0xff]  ;;  %3704 = vst [vmem:[#allocation16_spill] sm:$0xff] %v2816_v2  ;;  %v938_v5 = vmul.f32 %v2728_v40, %v902_v53  ;;  %v2824_v8 = vpop.f32.mrb[9].mxu1  ;;  %v1256_v10 = vadd.f32 %v1224_v56, %v1155_v61  ;;  %v2829_v15 = vmul.f32 %v2760_v13, %v801_v34  ;;  %v2832_v19 = vmul.f32 %v2760_v13, %v802_v44 }
 0x160   : > { %v1039_v14 = vmul.f32 %v2742_v58, %v1003_v59  ;;  %v1055_v16 = vadd.f32 %v1023_v4, %v954_v60  ;;  %v1257_v17 = vadd.f32 %v1225_v30, %v1156_v62  ;;  %v889_v20 = vld [vmem:[#allocation2 + $0x39] sm:$0xff]  ;;  %v2834_v22 = vadd.f32 %v939_v37, %v838_v63 }
 0x161   : > { %3705 = vst [vmem:[#allocation17_spill] sm:$0xff] %v2829_v15  ;;  %v970_v18 = vadd.f32 %v938_v5, %v837_v57  ;;  %3706 = vst [vmem:[#allocation18_spill] sm:$0xff] %v2832_v19  ;;  %v990_v21 = vld [vmem:[#allocation2 + $0x3a] sm:$0xff]  ;;  %v2837_v23 = vmul.f32 %v2754_v9, %v902_v53  ;;  %v2840_v24 = vmul.f32 %v2758_v12, %v1003_v59  ;;  %v2845_v28 = vpop.f32.mrb[10].mxu0  ;;  %v989_v63 = vld [vmem:[#allocation2 + $0x32] sm:$0xff] }
 0x162   : > { %v2843_v25 = vmul.f32 %v2820_v6, %v801_v34  ;;  %v905_v26 = vld [vmem:[#allocation2 + $0xf9] sm:$0xff]  ;;  %v2847_v30 = vpop.f32.mrb[10].mxu1  ;;  %v1357_v33 = vadd.f32 %v1325_v11, %v1256_v10  ;;  %v2850_v42 = vmul.f32 %v2820_v6, %v802_v44  ;;  %v2853_v37 = vmul.f32 %v2776_v32, %v902_v53  ;;  %v888_v34 = vld [vmem:[#allocation2 + $0x31] sm:$0xff]  ;;  %v2858_v51 = vpop.f32.mrb[11].mxu0 }
 0x163   : > { %3707 = vst [vmem:[#allocation19_spill] sm:$0xff] %v2837_v23  ;;  %3708 = vst [vmem:[#allocation20_spill] sm:$0xff] %v2840_v24  ;;  %v1006_v27 = vld [vmem:[#allocation2 + $0xfa] sm:$0xff]  ;;  %v2856_v43 = vmul.f32 %v2797_v48, %v1003_v59  ;;  %v2860_v52 = vpop.f32.mrb[11].mxu1  ;;  %v1071_v56 = vadd.f32 %v1039_v14, %v970_v18  ;;  %v925_v57 = vmul.f32 %v2728_v40, %v889_v20  ;;  %v904_v15 = vld [vmem:[#allocation2 + $0xf1] sm:$0xff] }
 0x164   : > { %3709 = vst [vmem:[#allocation21_spill] sm:$0xff] %v2843_v25  ;;  %3710 = vst [vmem:[#allocation22_spill] sm:$0xff] %v2850_v42  ;;  %v788_v50 = vld [vmem:[#allocation2 + $0x38] sm:$0xff]  ;;  %v2864_v60 = vmul.f32 %v2742_v58, %v990_v21  ;;  %v1227_v44 = vmul.f32 %v2754_v9, %v889_v20  ;;  %v2868_v53 = vmul.f32 %v2758_v12, %v990_v21 }
 0x165   : > { %3711 = vst [vmem:[#allocation23_spill] sm:$0xff] %v2853_v37  ;;  %3712 = vst [vmem:[#allocation24_spill] sm:$0xff] %v2856_v43  ;;  %v1530_v59 = vmul.f32 %v2776_v32, %v889_v20  ;;  %v1631_v61 = vmul.f32 %v2797_v48, %v990_v21  ;;  %v941_v62 = vmul.f32 %v2728_v40, %v905_v26  ;;  %v2879_v14 = vpop.f32.mrb[12].mxu0 }
 0x166   : > { %3713 = vst [vmem:[#allocation25_spill] sm:$0xff] %v2858_v51  ;;  %3714 = vst [vmem:[#allocation26_spill] sm:$0xff] %v2860_v52  ;;  %v2874_v4 = vmul.f32 %v2742_v58, %v1006_v27  ;;  %v823_v5 = vmul.f32 %v2730_v41, %v787_v49  ;;  %v824_v10 = vmul.f32 %v2730_v41, %v788_v50  ;;  %v2881_v18 = vpop.f32.mrb[12].mxu1  ;;  %v2889_v55 = vpop.f32.mrb[13].mxu0  ;;  %v992_v52 = vld [vmem:[#allocation2 + $0x52] sm:$0xff] }
 0x167   : > { %v924_v11 = vmul.f32 %v2728_v40, %v888_v34  ;;  %3715 = vst [vmem:[#allocation27_spill] sm:$0xff] %v2879_v14  ;;  %3716 = vst [vmem:[#allocation28_spill] sm:$0xff] %v2881_v18  ;;  %v2884_v20 = vmul.f32 %v2754_v9, %v905_v26  ;;  %v1056_v21 = vadd.f32 %v2770_v29, %v955_v3  ;;  %v2891_v37 = vpop.f32.mrb[13].mxu1  ;;  %v803_v29 = vld [vmem:[#allocation2 + $0xf0] sm:$0xff] }
 0x168   : > { %v1125_v2 = vmul.f32 %v2760_v13, %v787_v49  ;;  %v1126_v43 = vmul.f32 %v2760_v13, %v788_v50  ;;  %3717 = vst [vmem:[#allocation29_spill] sm:$0xff] %v2889_v55  ;;  %3718 = vst [vmem:[#allocation30_spill] sm:$0xff] %v2891_v37  ;;  %v2894_v54 = vmul.f32 %v2758_v12, %v1006_v27 }
 0x169   : > { %v2897_v24 = vmul.f32 %v2776_v32, %v905_v26  ;;  %v2900_v42 = vmul.f32 %v2797_v48, %v1006_v27  ;;  %v1025_v25 = vmul.f32 %v2742_v58, %v989_v63  ;;  %v956_v3 = vadd.f32 %v924_v11, %v823_v5  ;;  %v804_v27 = vld [vmem:[#allocation2 + $0xf8] sm:$0xff] }
 0x16a   : > { %v1157_v47 = vadd.f32 %v1125_v2, %v1055_v16  ;;  %v1358_v23 = vadd.f32 %v2774_v31, %v1257_v17  ;;  %v1428_v19 = vmul.f32 %v2820_v6, %v787_v49  ;;  %v2905_v37 = vadd.f32 %v925_v57, %v824_v10  ;;  %v2912_v18 = vpop.f32.mrb[14].mxu1  ;;  %v1005_v17 = vld [vmem:[#allocation2 + $0xf2] sm:$0xff] }
 0x16b   : > { %3719 = vst [vmem:[#allocation31_spill] sm:$0xff] %v2897_v24  ;;  %3720 = vst [vmem:[#allocation32_spill] sm:$0xff] %v2900_v42  ;;  %v1226_v55 = vmul.f32 %v2754_v9, %v888_v34  ;;  %v1327_v26 = vmul.f32 %v2758_v12, %v989_v63  ;;  %v1429_v24 = vmul.f32 %v2820_v6, %v788_v50  ;;  %v2910_v42 = vpop.f32.mrb[14].mxu0  ;;  %v2918_v57 = vpop.f32.mrb[15].mxu1 }
 0x16c   : > { %3721 = vst [vmem:[#allocation33_spill] sm:$0xff] %v2910_v42  ;;  %3722 = vst [vmem:[#allocation34_spill] sm:$0xff] %v2912_v18  ;;  %v1158_v5 = vadd.f32 %v1126_v43, %v1056_v21  ;;  %v1460_v2 = vadd.f32 %v1428_v19, %v1357_v33  ;;  %v1529_v31 = vmul.f32 %v2776_v32, %v888_v34  ;;  %v2916_v49 = vpop.f32.mrb[15].mxu0  ;;  %v2929_v34 = vld [vmem:[%s3683_s4] ss:$0 sm:$0xff] }
 0x16d   : > { %v839_v16 = vmul.f32 %v2730_v41, %v803_v29  ;;  %3723 = vst [vmem:[#allocation35_spill] sm:$0xff] %v2916_v49  ;;  %3724 = vst [vmem:[#allocation36_spill] sm:$0xff] %v2918_v57  ;;  %v1258_v10 = vadd.f32 %v1226_v55, %v1157_v47  ;;  %v1461_v11 = vadd.f32 %v1429_v24, %v1358_v23 }
 0x16e   : > { %v1630_v50 = vmul.f32 %v2797_v48, %v989_v63  ;;  %v940_v14 = vmul.f32 %v2728_v40, %v904_v15  ;;  %v1561_v42 = vadd.f32 %v1529_v31, %v1460_v2  ;;  %v840_v18 = vmul.f32 %v2730_v41, %v804_v27 }
 0x16f   : > { %v1072_v19 = vadd.f32 %v2786_v38, %v2834_v22  ;;  %v1141_v33 = vmul.f32 %v2760_v13, %v803_v29  ;;  %v1562_v43 = vadd.f32 %v1530_v59, %v1461_v11  ;;  %v1041_v55 = vmul.f32 %v2742_v58, %v1005_v17  ;;  %v891_v11 = vld [vmem:[#allocation2 + $0x51] sm:$0xff] }
 0x170   : > { %v972_v47 = vadd.f32 %v940_v14, %v839_v16  ;;  %v1142_v23 = vmul.f32 %v2760_v13, %v804_v27  ;;  %v1057_v24 = vadd.f32 %v1025_v25, %v956_v3  ;;  %v1662_v63 = vadd.f32 %v1630_v50, %v1561_v42 }
 0x171   : > { %v1173_v21 = vadd.f32 %v1141_v33, %v1071_v56  ;;  %v1242_v2 = vmul.f32 %v2754_v9, %v904_v15  ;;  %v1259_v31 = vadd.f32 %v1227_v44, %v1158_v5  ;;  %v1663_v38 = vadd.f32 %v1631_v61, %v1562_v43  ;;  %v907_v44 = vld [vmem:[#allocation2 + $0x111] sm:$0xff]  ;;  %v890_v5 = vld [vmem:[#allocation2 + $0x49] sm:$0xff] }
 0x172   : > { %v1174_v22 = vadd.f32 %v1142_v23, %v1072_v19  ;;  %v1343_v59 = vmul.f32 %v2758_v12, %v1005_v17  ;;  %v1359_v57 = vadd.f32 %v1327_v26, %v1258_v10  ;;  %v1701_v49 = vadd.f32 %v2929_v34, %v1662_v63  ;;  %v1008_v61 = vld [vmem:[#allocation2 + $0x112] sm:$0xff]  ;;  %v789_v26 = vld [vmem:[#allocation2 + $0x48] sm:$0xff] }
 0x173   : > { %v973_v14 = vadd.f32 %v941_v62, %v840_v18  ;;  %v1274_v16 = vadd.f32 %v1242_v2, %v1173_v21  ;;  %v1702_v51 = vadd.f32 %v2929_v34, %v1663_v38  ;;  %v2937_v25 = vadd.f32 %v1041_v55, %v972_v47  ;;  %v991_v23 = vld [vmem:[#allocation2 + $0x4a] sm:$0xff] }
 0x174   : > { %v2940_v42 = vmul.f32 %v2820_v6, %v803_v29  ;;  %v2943_v56 = vmul.f32 %v2820_v6, %v804_v27  ;;  %1733 = vst.msk [vmem:[%s2947_s12] sm:$0xff] %vm693_vm1, %v1701_v49  ;;  %v2952_v62 = vadd.f32 %v2884_v20, %v1174_v22  ;;  %v2955_v18 = vmul.f32 %v2776_v32, %v904_v15  ;;  %v790_v27 = vld [vmem:[#allocation2 + $0x50] sm:$0xff] }
 0x175   : > { %v2958_v29 = vmul.f32 %v2797_v48, %v1005_v17  ;;  %v927_v3 = vmul.f32 %v2728_v40, %v891_v11  ;;  %1734 = vst.msk [vmem:[%s2947_s12 + $0x8] sm:$0xff] %vm693_vm1, %v1702_v51  ;;  %v2963_v10 = vadd.f32 %v1343_v59, %v1274_v16  ;;  %v2966_v49 = vmul.f32 %v2742_v58, %v992_v52  ;;  %v805_v16 = vld [vmem:[#allocation2 + $0x108] sm:$0xff] }
 0x176   : > { %3725 = vst [vmem:[#allocation37_spill] sm:$0xff] %v2940_v42  ;;  %3726 = vst [vmem:[#allocation38_spill] sm:$0xff] %v2943_v56  ;;  %v1229_v20 = vmul.f32 %v2754_v9, %v891_v11  ;;  %v2970_v15 = vmul.f32 %v2758_v12, %v992_v52  ;;  %v1532_v17 = vmul.f32 %v2776_v32, %v891_v11 }
 0x177   : > { %3727 = vst [vmem:[#allocation39_spill] sm:$0xff] %v2955_v18  ;;  %3728 = vst [vmem:[#allocation40_spill] sm:$0xff] %v2958_v29  ;;  %v1633_v50 = vmul.f32 %v2797_v48, %v992_v52  ;;  %v943_v19 = vmul.f32 %v2728_v40, %v907_v44  ;;  %v2976_v33 = vmul.f32 %v2742_v58, %v1008_v61 }
 0x178   : > { %v2979_v51 = vmul.f32 %v2754_v9, %v907_v44  ;;  %v825_v43 = vmul.f32 %v2730_v41, %v789_v26  ;;  %v826_v47 = vmul.f32 %v2730_v41, %v790_v27  ;;  %v926_v55 = vmul.f32 %v2728_v40, %v890_v5 }
 0x179   : > { %3729 = vst [vmem:[#allocation41_spill] sm:$0xff] %v2976_v33  ;;  %v2985_v63 = vmul.f32 %v2758_v12, %v1008_v61  ;;  %v1058_v52 = vadd.f32 %v2864_v60, %v2905_v37  ;;  %v1127_v21 = vmul.f32 %v2760_v13, %v789_v26  ;;  %v1128_v2 = vmul.f32 %v2760_v13, %v790_v27  ;;  %v906_v60 = vld [vmem:[#allocation2 + $0x109] sm:$0xff] }
 0x17a   : > { %v1548_v38 = vmul.f32 %v2776_v32, %v907_v44  ;;  %v2993_v22 = vmul.f32 %v2797_v48, %v1008_v61  ;;  %v958_v59 = vadd.f32 %v926_v55, %v825_v43  ;;  %v1360_v11 = vadd.f32 %v2868_v53, %v1259_v31  ;;  %v806_v31 = vld [vmem:[#allocation2 + $0x110] sm:$0xff] }
 0x17b   : > { %3730 = vst [vmem:[#allocation42_spill] sm:$0xff] %v2985_v63  ;;  %v1027_v29 = vmul.f32 %v2742_v58, %v991_v23  ;;  %v1159_v18 = vadd.f32 %v1127_v21, %v1057_v24  ;;  %v1430_v56 = vmul.f32 %v2820_v6, %v789_v26  ;;  %v1431_v37 = vmul.f32 %v2820_v6, %v790_v27  ;;  %v1007_v24 = vld [vmem:[#allocation2 + $0x10a] sm:$0xff] }
 0x17c   : > { %v2999_v42 = vadd.f32 %v927_v3, %v826_v47  ;;  %v1160_v63 = vadd.f32 %v1128_v2, %v1058_v52  ;;  %v1228_v44 = vmul.f32 %v2754_v9, %v890_v5  ;;  %v1329_v61 = vmul.f32 %v2758_v12, %v991_v23 }
 0x17d   : > { %v1462_v33 = vadd.f32 %v1430_v56, %v1359_v57  ;;  %v1463_v43 = vadd.f32 %v1431_v37, %v1360_v11  ;;  %v1531_v53 = vmul.f32 %v2776_v32, %v890_v5  ;;  %v841_v55 = vmul.f32 %v2730_v41, %v805_v16 }
 0x17e   : > { %v3005_v21 = vadd.f32 %v1027_v29, %v958_v59  ;;  %v1632_v26 = vmul.f32 %v2797_v48, %v991_v23  ;;  %v942_v3 = vmul.f32 %v2728_v40, %v906_v60  ;;  %v1074_v27 = vadd.f32 %v2874_v4, %v973_v14 }
 0x17f   : > { %v1260_v47 = vadd.f32 %v1228_v44, %v1159_v18  ;;  %v1563_v52 = vadd.f32 %v1531_v53, %v1462_v33  ;;  %v1564_v2 = vadd.f32 %v1532_v17, %v1463_v43  ;;  %v1143_v57 = vmul.f32 %v2760_v13, %v805_v16 }
 0x180   : > { %v842_v56 = vmul.f32 %v2730_v41, %v806_v31  ;;  %v1043_v5 = vmul.f32 %v2742_v58, %v1007_v24  ;;  %v1144_v11 = vmul.f32 %v2760_v13, %v806_v31  ;;  %v1244_v29 = vmul.f32 %v2754_v9, %v906_v60 }
 0x181   : > { %v1664_v59 = vadd.f32 %v1632_v26, %v1563_v52  ;;  %v1665_v23 = vadd.f32 %v1633_v50, %v1564_v2  ;;  %v974_v37 = vadd.f32 %v942_v3, %v841_v55  ;;  %v1175_v4 = vadd.f32 %v1143_v57, %v2937_v25  ;;  %v1422_v57 = vld [vmem:[#allocation2 + $0x198] sm:$0xff] }
 0x182   : > { %v1176_v14 = vadd.f32 %v1144_v11, %v1074_v27  ;;  %v1345_v18 = vmul.f32 %v2758_v12, %v1007_v24  ;;  %v1376_v17 = vadd.f32 %v2894_v54, %v2952_v62  ;;  %v1446_v33 = vmul.f32 %v2820_v6, %v805_v16  ;;  %v3735_v11 = vld [vmem:[#allocation29_spill] sm:$0xff] }
 0x183   : > { %v1703_v44 = vadd.f32 %v2929_v34, %v1664_v59  ;;  %v1704_v43 = vadd.f32 %v2929_v34, %v1665_v23  ;;  %v1276_v53 = vadd.f32 %v1244_v29, %v1175_v4  ;;  %v1447_v26 = vmul.f32 %v2820_v6, %v806_v31  ;;  %v3736_v59 = vld [vmem:[#allocation30_spill] sm:$0xff]  ;;  %v1523_v4 = vld [vmem:[#allocation2 + $0x199] sm:$0xff] }
 0x184   : > { %v1261_v50 = vadd.f32 %v1229_v20, %v1160_v63  ;;  %v3023_v52 = vadd.f32 %v1329_v61, %v1260_v47  ;;  %v1478_v25 = vadd.f32 %v1446_v33, %v2963_v10  ;;  %v1547_v55 = vmul.f32 %v2776_v32, %v906_v60  ;;  %v3738_v33 = vld [vmem:[#allocation34_spill] sm:$0xff] }
 0x185   : > { %1735 = vst.msk [vmem:[%s2947_s12 + $0x10] sm:$0xff] %vm693_vm1, %v1703_v44  ;;  %1736 = vst.msk [vmem:[%s2947_s12 + $0x18] sm:$0xff] %vm693_vm1, %v1704_v43  ;;  %v975_v54 = vadd.f32 %v943_v19, %v842_v56  ;;  %v1479_v62 = vadd.f32 %v1447_v26, %v1376_v17  ;;  %v570_v16 = vadd.f32 %v2780_v35, %v2726_v39  ;;  %v3734_v56 = vld [vmem:[#allocation28_spill] sm:$0xff]  ;;  %v3739_v43 = vld [vmem:[#allocation35_spill] sm:$0xff] }
 0x186   : > { %v650_v3 = vadd.f32 %v2782_v36, %v2726_v39  ;;  %v3035_v31 = vadd.f32 %v1043_v5, %v974_v37  ;;  %v1579_v20 = vadd.f32 %v1547_v55, %v1478_v25  ;;  %v1648_v63 = vmul.f32 %v2797_v48, %v1007_v24  ;;  %v1423_v37 = vld [vmem:[#allocation2 + $0x1a0] sm:$0xff]  ;;  %v3740_v26 = vld [vmem:[#allocation36_spill] sm:$0xff] }
 0x187   : > { %v565_v10 = vadd.f32 %v2726_v39, %v2790_v45  ;;  %v1277_v60 = vadd.f32 %v2979_v51, %v1176_v14  ;;  %v3041_v61 = vadd.f32 %v1345_v18, %v1276_v53  ;;  %v1580_v19 = vadd.f32 %v1548_v38, %v1479_v62  ;;  %757 = vst.msk [vmem:[#allocation2 + $0x69] sm:$0xff] %vm693_vm1, %v570_v16  ;;  %v1524_v14 = vld [vmem:[#allocation2 + $0x1a1] sm:$0xff] }
 0x188   : > { %773 = vst.msk [vmem:[#allocation2 + $0x129] sm:$0xff] %vm693_vm1, %v650_v3  ;;  %v645_v35 = vadd.f32 %v2726_v39, %v2792_v46  ;;  %v1680_v36 = vadd.f32 %v1648_v63, %v1579_v20  ;;  %v580_v24 = vadd.f32 %v2811_v0, %v2726_v39  ;;  %v660_v45 = vadd.f32 %v2813_v1, %v2726_v39  ;;  %v3731_v1 = vld [vmem:[#allocation25_spill] sm:$0xff]  ;;  %v3742_v63 = vld [vmem:[#allocation42_spill] sm:$0xff] }
 0x189   : > { %756 = vst.msk [vmem:[#allocation2 + $0x61] sm:$0xff] %vm693_vm1, %v565_v10  ;;  %v575_v51 = vadd.f32 %v2726_v39, %v2822_v7  ;;  %v1681_v38 = vadd.f32 %v2993_v22, %v1580_v19  ;;  %v655_v27 = vadd.f32 %v2726_v39, %v2824_v8  ;;  %v590_v46 = vadd.f32 %v2845_v28, %v2726_v39  ;;  %v3732_v22 = vld [vmem:[#allocation26_spill] sm:$0xff]  ;;  %v3733_v28 = vld [vmem:[#allocation27_spill] sm:$0xff]  ;;  %v3737_v18 = vld [vmem:[#allocation33_spill] sm:$0xff] }
 0x18a   : > { %772 = vst.msk [vmem:[#allocation2 + $0x121] sm:$0xff] %vm693_vm1, %v645_v35  ;;  %v670_v47 = vadd.f32 %v2847_v30, %v2726_v39  ;;  %v1719_v0 = vadd.f32 %v2929_v34, %v1680_v36  ;;  %759 = vst.msk [vmem:[#allocation2 + $0x81] sm:$0xff] %vm693_vm1, %v580_v24  ;;  %v585_v7 = vadd.f32 %v2726_v39, %v3731_v1  ;;  %v1624_v55 = vld [vmem:[#allocation2 + $0x19a] sm:$0xff] }
 0x18b   : > { %775 = vst.msk [vmem:[#allocation2 + $0x141] sm:$0xff] %vm693_vm1, %v660_v45  ;;  %758 = vst.msk [vmem:[#allocation2 + $0x79] sm:$0xff] %vm693_vm1, %v575_v51  ;;  %v665_v8 = vadd.f32 %v2726_v39, %v3732_v22  ;;  %v600_v2 = vadd.f32 %v3733_v28, %v2726_v39  ;;  %v1720_v30 = vadd.f32 %v2929_v34, %v1681_v38  ;;  %v3741_v3 = vld [vmem:[#allocation41_spill] sm:$0xff] }
 0x18c   : > { %774 = vst.msk [vmem:[#allocation2 + $0x139] sm:$0xff] %vm693_vm1, %v655_v27  ;;  %761 = vst.msk [vmem:[#allocation2 + $0x99] sm:$0xff] %vm693_vm1, %v590_v46  ;;  %v680_v5 = vadd.f32 %v3734_v56, %v2726_v39  ;;  %v595_v29 = vadd.f32 %v2726_v39, %v3735_v11  ;;  %v675_v23 = vadd.f32 %v2726_v39, %v3736_v59 }
 0x18d   : > { %777 = vst.msk [vmem:[#allocation2 + $0x159] sm:$0xff] %vm693_vm1, %v670_v47  ;;  %1751 = vst.msk [vmem:[%s2947_s12 + $0x90] sm:$0xff] %vm693_vm1, %v1719_v0  ;;  %v610_v17 = vadd.f32 %v3737_v18, %v2726_v39  ;;  %v690_v44 = vadd.f32 %v3738_v33, %v2726_v39  ;;  %v605_v53 = vadd.f32 %v2726_v39, %v3739_v43 }
 0x18e   : > { %760 = vst.msk [vmem:[#allocation2 + $0x91] sm:$0xff] %vm693_vm1, %v585_v7  ;;  %776 = vst.msk [vmem:[#allocation2 + $0x151] sm:$0xff] %vm693_vm1, %v665_v8  ;;  %v685_v25 = vadd.f32 %v2726_v39, %v3740_v26  ;;  %v1060_v62 = vadd.f32 %v2966_v49, %v2999_v42  ;;  %v1362_v16 = vadd.f32 %v2970_v15, %v1261_v50  ;;  %v893_v39 = vld [vmem:[#allocation2 + $0x69] sm:$0xff] }
 0x18f   : > { %763 = vst.msk [vmem:[#allocation2 + $0xb1] sm:$0xff] %vm693_vm1, %v600_v2  ;;  %1752 = vst.msk [vmem:[%s2947_s12 + $0x98] sm:$0xff] %vm693_vm1, %v1720_v30  ;;  %v3101_v20 = vadd.f32 %v3741_v3, %v975_v54  ;;  %v3104_v10 = vadd.f32 %v3742_v63, %v1277_v60  ;;  %v994_v19 = vld [vmem:[#allocation2 + $0x6a] sm:$0xff]  ;;  %v3114_v42 = vmul.f32 %v2820_v6, %v1422_v57 }
 0x190   : > { %779 = vst.msk [vmem:[#allocation2 + $0x171] sm:$0xff] %vm693_vm1, %v680_v5  ;;  %762 = vst.msk [vmem:[#allocation2 + $0xa9] sm:$0xff] %vm693_vm1, %v595_v29  ;;  %v909_v35 = vld [vmem:[#allocation2 + $0x129] sm:$0xff]  ;;  %v3117_v49 = vmul.f32 %v2820_v6, %v1423_v37  ;;  %v3120_v15 = vmul.f32 %v2776_v32, %v1523_v4  ;;  %v3123_v50 = vmul.f32 %v2776_v32, %v1524_v14  ;;  %v791_v45 = vld [vmem:[#allocation2 + $0x60] sm:$0xff] }
 0x191   : > { %778 = vst.msk [vmem:[#allocation2 + $0x169] sm:$0xff] %vm693_vm1, %v675_v23  ;;  %765 = vst.msk [vmem:[#allocation2 + $0xc9] sm:$0xff] %vm693_vm1, %v610_v17  ;;  %v929_v54 = vmul.f32 %v2728_v40, %v893_v39  ;;  %v3127_v60 = vmul.f32 %v2742_v58, %v994_v19  ;;  %v1231_v36 = vmul.f32 %v2754_v9, %v893_v39  ;;  %v1010_v24 = vld [vmem:[#allocation2 + $0x12a] sm:$0xff]  ;;  %v892_v1 = vld [vmem:[#allocation2 + $0x61] sm:$0xff] }
 0x192   : > { %781 = vst.msk [vmem:[#allocation2 + $0x189] sm:$0xff] %vm693_vm1, %v690_v44  ;;  %764 = vst.msk [vmem:[#allocation2 + $0xc1] sm:$0xff] %vm693_vm1, %v605_v53  ;;  %v792_v51 = vld [vmem:[#allocation2 + $0x68] sm:$0xff]  ;;  %v3131_v38 = vmul.f32 %v2797_v48, %v1624_v55  ;;  %v3134_v27 = vmul.f32 %v2758_v12, %v994_v19  ;;  %v1534_v46 = vmul.f32 %v2776_v32, %v893_v39  ;;  %v807_v37 = vld [vmem:[#allocation2 + $0x120] sm:$0xff] }
 0x193   : > { %780 = vst.msk [vmem:[#allocation2 + $0x181] sm:$0xff] %vm693_vm1, %v685_v25  ;;  %v1635_v47 = vmul.f32 %v2797_v48, %v994_v19  ;;  %v945_v0 = vmul.f32 %v2728_v40, %v909_v35  ;;  %v993_v7 = vld [vmem:[#allocation2 + $0x62] sm:$0xff]  ;;  %v3140_v22 = vmul.f32 %v2742_v58, %v1010_v24  ;;  %v1247_v8 = vmul.f32 %v2754_v9, %v909_v35 }
 0x194   : > { %v3144_v28 = vmul.f32 %v2758_v12, %v1010_v24  ;;  %v3147_v2 = vmul.f32 %v2776_v32, %v909_v35  ;;  %v3150_v57 = vmul.f32 %v2797_v48, %v1010_v24  ;;  %v827_v30 = vmul.f32 %v2730_v41, %v791_v45  ;;  %v808_v33 = vld [vmem:[#allocation2 + $0x128] sm:$0xff] }
 0x195   : > { %v828_v56 = vmul.f32 %v2730_v41, %v792_v51  ;;  %v928_v5 = vmul.f32 %v2728_v40, %v892_v1  ;;  %v1029_v11 = vmul.f32 %v2742_v58, %v993_v7  ;;  %v1129_v29 = vmul.f32 %v2760_v13, %v791_v45  ;;  %v908_v44 = vld [vmem:[#allocation2 + $0x121] sm:$0xff] }
 0x196   : > { %v1130_v59 = vmul.f32 %v2760_v13, %v792_v51  ;;  %v1230_v23 = vmul.f32 %v2754_v9, %v892_v1  ;;  %v1331_v14 = vmul.f32 %v2758_v12, %v993_v7  ;;  %v1432_v18 = vmul.f32 %v2820_v6, %v791_v45  ;;  %v1009_v19 = vld [vmem:[#allocation2 + $0x122] sm:$0xff] }
 0x197   : > { %v960_v4 = vadd.f32 %v928_v5, %v827_v30  ;;  %v1433_v17 = vmul.f32 %v2820_v6, %v792_v51  ;;  %v3162_v43 = vadd.f32 %v929_v54, %v828_v56  ;;  %v1161_v53 = vadd.f32 %v1129_v29, %v3005_v21 }
 0x198   : > { %v1162_v26 = vadd.f32 %v1130_v59, %v1060_v62  ;;  %v1533_v25 = vmul.f32 %v2776_v32, %v892_v1  ;;  %v1464_v55 = vadd.f32 %v1432_v18, %v3023_v52  ;;  %v1634_v63 = vmul.f32 %v2797_v48, %v993_v7 }
 0x199   : > { %v1465_v3 = vadd.f32 %v1433_v17, %v1362_v16  ;;  %v843_v39 = vmul.f32 %v2730_v41, %v807_v37  ;;  %v3169_v35 = vadd.f32 %v1029_v11, %v960_v4  ;;  %v1262_v24 = vadd.f32 %v1230_v23, %v1161_v53  ;;  %v895_v4 = vld [vmem:[#allocation2 + $0x81] sm:$0xff] }
 0x19a   : > { %v844_v45 = vmul.f32 %v2730_v41, %v808_v33  ;;  %v944_v54 = vmul.f32 %v2728_v40, %v908_v44  ;;  %v3173_v51 = vadd.f32 %v1231_v36, %v1162_v26  ;;  %v1565_v21 = vadd.f32 %v1533_v25, %v1464_v55  ;;  %v996_v17 = vld [vmem:[#allocation2 + $0x82] sm:$0xff] }
 0x19b   : > { %v1566_v62 = vadd.f32 %v1534_v46, %v1465_v3  ;;  %v1145_v1 = vmul.f32 %v2760_v13, %v807_v37  ;;  %v3176_v52 = vadd.f32 %v1331_v14, %v1262_v24  ;;  %v1045_v7 = vmul.f32 %v2742_v58, %v1009_v19  ;;  %v911_v25 = vld [vmem:[#allocation2 + $0x141] sm:$0xff]  ;;  %v793_v24 = vld [vmem:[#allocation2 + $0x78] sm:$0xff] }
 0x19c   : > { %v976_v16 = vadd.f32 %v944_v54, %v843_v39  ;;  %v1146_v30 = vmul.f32 %v2760_v13, %v808_v33  ;;  %v1666_v56 = vadd.f32 %v1634_v63, %v1565_v21  ;;  %v1246_v29 = vmul.f32 %v2754_v9, %v908_v44  ;;  %v1012_v63 = vld [vmem:[#allocation2 + $0x142] sm:$0xff] }
 0x19d   : > { %v1667_v5 = vadd.f32 %v1635_v47, %v1566_v62  ;;  %v1177_v11 = vadd.f32 %v1145_v1, %v3035_v31  ;;  %v3182_v36 = vadd.f32 %v945_v0, %v844_v45  ;;  %v1347_v59 = vmul.f32 %v2758_v12, %v1009_v19  ;;  %v794_v45 = vld [vmem:[#allocation2 + $0x80] sm:$0xff] }
 0x19e   : > { %v1178_v46 = vadd.f32 %v1146_v30, %v3101_v20  ;;  %v1448_v23 = vmul.f32 %v2820_v6, %v807_v37  ;;  %v1705_v14 = vadd.f32 %v2929_v34, %v1666_v56  ;;  %v1449_v31 = vmul.f32 %v2820_v6, %v808_v33  ;;  %v894_v62 = vld [vmem:[#allocation2 + $0x79] sm:$0xff] }
 0x19f   : > { %v1706_v18 = vadd.f32 %v2929_v34, %v1667_v5  ;;  %v1278_v47 = vadd.f32 %v1246_v29, %v1177_v11  ;;  %v3190_v53 = vadd.f32 %v1045_v7, %v976_v16  ;;  %v1549_v20 = vmul.f32 %v2776_v32, %v908_v44  ;;  %v995_v56 = vld [vmem:[#allocation2 + $0x7a] sm:$0xff] }
 0x1a0   : > { %v3192_v0 = vadd.f32 %v1247_v8, %v1178_v46  ;;  %v1480_v26 = vadd.f32 %v1448_v23, %v3041_v61  ;;  %1737 = vst.msk [vmem:[%s2947_s12 + $0x20] sm:$0xff] %vm693_vm1, %v1705_v14  ;;  %v1481_v55 = vadd.f32 %v1449_v31, %v3104_v10  ;;  %v1650_v33 = vmul.f32 %v2797_v48, %v1009_v19  ;;  %v809_v31 = vld [vmem:[#allocation2 + $0x138] sm:$0xff] }
 0x1a1   : > { %1738 = vst.msk [vmem:[%s2947_s12 + $0x28] sm:$0xff] %vm693_vm1, %v1706_v18  ;;  %v3200_v37 = vadd.f32 %v1347_v59, %v1278_v47  ;;  %v931_v3 = vmul.f32 %v2728_v40, %v895_v4  ;;  %v3206_v39 = vmul.f32 %v2742_v58, %v996_v17  ;;  %v1233_v61 = vmul.f32 %v2754_v9, %v895_v4 }
 0x1a2   : > { %v1581_v8 = vadd.f32 %v1549_v20, %v1480_v26  ;;  %v3210_v44 = vmul.f32 %v2758_v12, %v996_v17  ;;  %v1582_v54 = vadd.f32 %v3147_v2, %v1481_v55  ;;  %v1536_v10 = vmul.f32 %v2776_v32, %v895_v4 }
 0x1a3   : > { %v1637_v19 = vmul.f32 %v2797_v48, %v996_v17  ;;  %v947_v21 = vmul.f32 %v2728_v40, %v911_v25  ;;  %v3217_v16 = vmul.f32 %v2742_v58, %v1012_v63  ;;  %v3220_v7 = vmul.f32 %v2754_v9, %v911_v25 }
 0x1a4   : > { %v1682_v1 = vadd.f32 %v1650_v33, %v1581_v8  ;;  %v3223_v30 = vmul.f32 %v2758_v12, %v1012_v63  ;;  %v1683_v2 = vadd.f32 %v3150_v57, %v1582_v54  ;;  %v3227_v5 = vmul.f32 %v2776_v32, %v911_v25  ;;  %v910_v8 = vld [vmem:[#allocation2 + $0x139] sm:$0xff] }
 0x1a5   : > { %v829_v11 = vmul.f32 %v2730_v41, %v793_v24  ;;  %v830_v29 = vmul.f32 %v2730_v41, %v794_v45  ;;  %v3233_v59 = vmul.f32 %v2797_v48, %v1012_v63  ;;  %v930_v23 = vmul.f32 %v2728_v40, %v894_v62  ;;  %v810_v63 = vld [vmem:[#allocation2 + $0x140] sm:$0xff] }
 0x1a6   : > { %v1721_v46 = vadd.f32 %v2929_v34, %v1682_v1  ;;  %v1062_v4 = vadd.f32 %v3127_v60, %v3162_v43  ;;  %v1722_v57 = vadd.f32 %v2929_v34, %v1683_v2  ;;  %v1031_v14 = vmul.f32 %v2742_v58, %v995_v56 }
 0x1a7   : > { %v1131_v18 = vmul.f32 %v2760_v13, %v793_v24  ;;  %v1132_v47 = vmul.f32 %v2760_v13, %v794_v45  ;;  %v962_v17 = vadd.f32 %v930_v23, %v829_v11  ;;  %v3244_v26 = vadd.f32 %v931_v3, %v830_v29 }
 0x1a8   : > { %1753 = vst.msk [vmem:[%s2947_s12 + $0xa0] sm:$0xff] %vm693_vm1, %v1721_v46  ;;  %v1232_v20 = vmul.f32 %v2754_v9, %v894_v62  ;;  %v1364_v25 = vadd.f32 %v3134_v27, %v3173_v51  ;;  %1754 = vst.msk [vmem:[%s2947_s12 + $0xa8] sm:$0xff] %vm693_vm1, %v1722_v57  ;;  %v1434_v55 = vmul.f32 %v2820_v6, %v793_v24  ;;  %v1011_v27 = vld [vmem:[#allocation2 + $0x13a] sm:$0xff] }
 0x1a9   : > { %v1163_v60 = vadd.f32 %v1131_v18, %v3169_v35  ;;  %v1164_v43 = vadd.f32 %v1132_v47, %v1062_v4  ;;  %v1435_v33 = vmul.f32 %v2820_v6, %v794_v45  ;;  %v3254_v54 = vadd.f32 %v1031_v14, %v962_v17 }
 0x1aa   : > { %v1333_v3 = vmul.f32 %v2758_v12, %v995_v56  ;;  %v1535_v1 = vmul.f32 %v2776_v32, %v894_v62  ;;  %v845_v2 = vmul.f32 %v2730_v41, %v809_v31  ;;  %v1466_v11 = vadd.f32 %v1434_v55, %v3176_v52  ;;  %v998_v55 = vld [vmem:[#allocation2 + $0x9a] sm:$0xff] }
 0x1ab   : > { %v1264_v51 = vadd.f32 %v1232_v20, %v1163_v60  ;;  %v1467_v35 = vadd.f32 %v1435_v33, %v1364_v25  ;;  %v1636_v29 = vmul.f32 %v2797_v48, %v995_v56  ;;  %v3261_v24 = vadd.f32 %v1233_v61, %v1164_v43  ;;  %v897_v25 = vld [vmem:[#allocation2 + $0x99] sm:$0xff] }
 0x1ac   : > { %v846_v45 = vmul.f32 %v2730_v41, %v810_v63  ;;  %v946_v46 = vmul.f32 %v2728_v40, %v910_v8  ;;  %v1078_v23 = vadd.f32 %v3140_v22, %v3182_v36  ;;  %v1567_v4 = vadd.f32 %v1535_v1, %v1466_v11 }
 0x1ad   : > { %v1568_v62 = vadd.f32 %v1536_v10, %v1467_v35  ;;  %v1047_v57 = vmul.f32 %v2742_v58, %v1011_v27  ;;  %v1147_v14 = vmul.f32 %v2760_v13, %v809_v31  ;;  %v3269_v18 = vadd.f32 %v1333_v3, %v1264_v51 }
 0x1ae   : > { %v978_v52 = vadd.f32 %v946_v46, %v845_v2  ;;  %v1148_v56 = vmul.f32 %v2760_v13, %v810_v63  ;;  %v1248_v61 = vmul.f32 %v2754_v9, %v910_v8  ;;  %v1668_v47 = vadd.f32 %v1636_v29, %v1567_v4  ;;  %v3297_v2 = vld [vmem:[#allocation8 + $0x1] ss:$0 sm:$0xff] }
 0x1af   : > { %v1669_v41 = vadd.f32 %v1637_v19, %v1568_v62  ;;  %v1179_v40 = vadd.f32 %v1147_v14, %v3190_v53  ;;  %v1349_v17 = vmul.f32 %v2758_v12, %v1011_v27  ;;  %v3275_v22 = vadd.f32 %v947_v21, %v846_v45  ;;  %v795_v29 = vld [vmem:[#allocation2 + $0x90] sm:$0xff]  ;;  %v796_v45 = vld [vmem:[#allocation2 + $0x98] sm:$0xff] }
 0x1b0   : > { %v1180_v36 = vadd.f32 %v1148_v56, %v1078_v23  ;;  %v1380_v10 = vadd.f32 %v3144_v28, %v3192_v0  ;;  %v1450_v20 = vmul.f32 %v2820_v6, %v809_v31  ;;  %v1707_v60 = vadd.f32 %v2929_v34, %v1668_v47  ;;  %v913_v0 = vld [vmem:[#allocation2 + $0x159] sm:$0xff]  ;;  %v896_v62 = vld [vmem:[#allocation2 + $0x91] sm:$0xff] }
 0x1b1   : > { %v1708_v43 = vadd.f32 %v2929_v34, %v1669_v41  ;;  %v1280_v19 = vadd.f32 %v1248_v61, %v1179_v40  ;;  %v1451_v53 = vmul.f32 %v2820_v6, %v810_v63  ;;  %v3283_v33 = vadd.f32 %v1047_v57, %v978_v52  ;;  %v3311_v14 = vld [vmem:[#allocation8 + $0x2] ss:$0 sm:$0xff]  ;;  %v3326_v41 = vld [vmem:[#allocation8] ss:$0 sm:$0xff] }
 0x1b2   : > { %v3286_v21 = vadd.f32 %v3220_v7, %v1180_v36  ;;  %v1482_v3 = vadd.f32 %v1450_v20, %v3200_v37  ;;  %v1551_v28 = vmul.f32 %v2776_v32, %v910_v8  ;;  %1739 = vst.msk [vmem:[%s2947_s12 + $0x30] sm:$0xff] %vm693_vm1, %v1707_v60  ;;  %v1652_v63 = vmul.f32 %v2797_v48, %v1011_v27  ;;  %v1014_v7 = vld [vmem:[#allocation2 + $0x15a] sm:$0xff] }
 0x1b3   : > { %1740 = vst.msk [vmem:[%s2947_s12 + $0x38] sm:$0xff] %vm693_vm1, %v1708_v43  ;;  %v3294_v31 = vadd.f32 %v1349_v17, %v1280_v19  ;;  %v1483_v1 = vadd.f32 %v1451_v53, %v1380_v10  ;;  %v933_v51 = vmul.f32 %v3297_v2, %v897_v25  ;;  %v3301_v37 = vmul.f32 %v2742_v58, %v998_v55  ;;  %v811_v43 = vld [vmem:[#allocation2 + $0x150] sm:$0xff] }
 0x1b4   : > { %v1583_v11 = vadd.f32 %v1551_v28, %v1482_v3  ;;  %v1235_v8 = vmul.f32 %v2754_v9, %v897_v25  ;;  %v3305_v35 = vmul.f32 %v2758_v12, %v998_v55  ;;  %v1538_v27 = vmul.f32 %v2776_v32, %v897_v25 }
 0x1b5   : > { %v1584_v46 = vadd.f32 %v3227_v5, %v1483_v1  ;;  %v1639_v23 = vmul.f32 %v2797_v48, %v998_v55  ;;  %v949_v4 = vmul.f32 %v3297_v2, %v913_v0  ;;  %v3314_v58 = vmul.f32 %v3311_v14, %v1014_v7  ;;  %v997_v5 = vld [vmem:[#allocation2 + $0x92] sm:$0xff] }
 0x1b6   : > { %v1684_v57 = vadd.f32 %v1652_v63, %v1583_v11  ;;  %v3317_v52 = vmul.f32 %v2754_v9, %v913_v0  ;;  %v3320_v56 = vmul.f32 %v2758_v12, %v1014_v7  ;;  %v3324_v47 = vmul.f32 %v2776_v32, %v913_v0  ;;  %v3345_v55 = vld [vmem:[#allocation8 + $0x5] ss:$0 sm:$0xff]  ;;  %v812_v1 = vld [vmem:[#allocation2 + $0x158] sm:$0xff] }
 0x1b7   : > { %v1685_v61 = vadd.f32 %v3233_v59, %v1584_v46  ;;  %v831_v40 = vmul.f32 %v3326_v41, %v795_v29  ;;  %v832_v17 = vmul.f32 %v3326_v41, %v796_v45  ;;  %v3332_v36 = vmul.f32 %v2797_v48, %v1014_v7  ;;  %v912_v63 = vld [vmem:[#allocation2 + $0x151] sm:$0xff] }
 0x1b8   : > { %v1723_v9 = vadd.f32 %v2929_v34, %v1684_v57  ;;  %v932_v12 = vmul.f32 %v3297_v2, %v896_v62  ;;  %v1064_v59 = vadd.f32 %v3206_v39, %v3244_v26  ;;  %v1033_v20 = vmul.f32 %v3311_v14, %v997_v5  ;;  %v3357_v7 = vld [vmem:[#allocation8 + $0x6] ss:$0 sm:$0xff] }
 0x1b9   : > { %v1724_v10 = vadd.f32 %v2929_v34, %v1685_v61  ;;  %v1133_v25 = vmul.f32 %v2760_v13, %v795_v29  ;;  %v1134_v60 = vmul.f32 %v2760_v13, %v796_v45  ;;  %v3343_v53 = vadd.f32 %v933_v51, %v832_v17 }
 0x1ba   : > { %1755 = vst.msk [vmem:[%s2947_s12 + $0xb0] sm:$0xff] %vm693_vm1, %v1723_v9  ;;  %v964_v19 = vadd.f32 %v932_v12, %v831_v40  ;;  %v1234_v3 = vmul.f32 %v3345_v55, %v896_v62  ;;  %v1366_v39 = vadd.f32 %v3210_v44, %v3261_v24  ;;  %v1436_v13 = vmul.f32 %v2820_v6, %v795_v29  ;;  %v1013_v24 = vld [vmem:[#allocation2 + $0x152] sm:$0xff] }
 0x1bb   : > { %1756 = vst.msk [vmem:[%s2947_s12 + $0xb8] sm:$0xff] %vm693_vm1, %v1724_v10  ;;  %v1165_v26 = vadd.f32 %v1133_v25, %v3254_v54  ;;  %v1166_v28 = vadd.f32 %v1134_v60, %v1064_v59  ;;  %v1437_v0 = vmul.f32 %v2820_v6, %v796_v45  ;;  %v1335_v11 = vmul.f32 %v3357_v7, %v997_v5  ;;  %v3371_v59 = vld [vmem:[#allocation8 + $0x4] ss:$0 sm:$0xff] }
 0x1bc   : > { %v3355_v51 = vadd.f32 %v1033_v20, %v964_v19  ;;  %v1537_v46 = vmul.f32 %v2776_v32, %v896_v62  ;;  %v847_v44 = vmul.f32 %v3326_v41, %v811_v43  ;;  %v1468_v54 = vadd.f32 %v1436_v13, %v3269_v18  ;;  %v1000_v13 = vld [vmem:[#allocation2 + $0xb2] sm:$0xff] }
 0x1bd   : > { %v1266_v57 = vadd.f32 %v1234_v3, %v1165_v26  ;;  %v1469_v61 = vadd.f32 %v1437_v0, %v1366_v39  ;;  %v1638_v29 = vmul.f32 %v2797_v48, %v997_v5  ;;  %v3364_v45 = vadd.f32 %v1235_v8, %v1166_v28  ;;  %v899_v39 = vld [vmem:[#allocation2 + $0xb1] sm:$0xff] }
 0x1be   : > { %v848_v40 = vmul.f32 %v3326_v41, %v812_v1  ;;  %v948_v17 = vmul.f32 %v3297_v2, %v912_v63  ;;  %v1080_v9 = vadd.f32 %v3217_v16, %v3275_v22  ;;  %v1569_v12 = vadd.f32 %v1537_v46, %v1468_v54  ;;  %v3394_v46 = vld [vmem:[#allocation8 + $0x9] ss:$0 sm:$0xff] }
 0x1bf   : > { %v1570_v32 = vadd.f32 %v1538_v27, %v1469_v61  ;;  %v1049_v62 = vmul.f32 %v3311_v14, %v1013_v24  ;;  %v1149_v18 = vmul.f32 %v3371_v59, %v811_v43  ;;  %v3374_v10 = vadd.f32 %v1335_v11, %v1266_v57  ;;  %v1016_v57 = vld [vmem:[#allocation2 + $0x172] sm:$0xff] }
 0x1c0   : > { %v980_v48 = vadd.f32 %v948_v17, %v847_v44  ;;  %v1150_v8 = vmul.f32 %v3371_v59, %v812_v1  ;;  %v1250_v5 = vmul.f32 %v3345_v55, %v912_v63  ;;  %v1670_v20 = vadd.f32 %v1638_v29, %v1569_v12  ;;  %v797_v29 = vld [vmem:[#allocation2 + $0xa8] sm:$0xff] }
 0x1c1   : > { %v1671_v25 = vadd.f32 %v1639_v23, %v1570_v32  ;;  %v1181_v60 = vadd.f32 %v1149_v18, %v3283_v33  ;;  %v1351_v16 = vmul.f32 %v3357_v7, %v1013_v24  ;;  %v3380_v22 = vadd.f32 %v949_v4, %v848_v40  ;;  %v798_v40 = vld [vmem:[#allocation2 + $0xb0] sm:$0xff] }
 0x1c2   : > { %v1182_v27 = vadd.f32 %v1150_v8, %v1080_v9  ;;  %v1382_v19 = vadd.f32 %v3223_v30, %v3286_v21  ;;  %v1452_v3 = vmul.f32 %v2820_v6, %v811_v43  ;;  %v1709_v26 = vadd.f32 %v2929_v34, %v1670_v20  ;;  %v915_v21 = vld [vmem:[#allocation2 + $0x171] sm:$0xff]  ;;  %v898_v32 = vld [vmem:[#allocation2 + $0xa9] sm:$0xff] }
 0x1c3   : > { %v1710_v28 = vadd.f32 %v2929_v34, %v1671_v25  ;;  %v1282_v23 = vadd.f32 %v1250_v5, %v1181_v60  ;;  %v1453_v33 = vmul.f32 %v2820_v6, %v812_v1  ;;  %v3388_v0 = vadd.f32 %v1049_v62, %v980_v48  ;;  %v3403_v1 = vld [vmem:[#allocation8 + $0xa] ss:$0 sm:$0xff]  ;;  %v999_v5 = vld [vmem:[#allocation2 + $0xaa] sm:$0xff] }
 0x1c4   : > { %v3391_v4 = vadd.f32 %v3317_v52, %v1182_v27  ;;  %v1484_v11 = vadd.f32 %v1452_v3, %v3294_v31  ;;  %v1553_v30 = vmul.f32 %v3394_v46, %v912_v63  ;;  %1741 = vst.msk [vmem:[%s2947_s12 + $0x40] sm:$0xff] %vm693_vm1, %v1709_v26  ;;  %v1654_v44 = vmul.f32 %v3403_v1, %v1013_v24 }
 0x1c5   : > { %1742 = vst.msk [vmem:[%s2947_s12 + $0x48] sm:$0xff] %vm693_vm1, %v1710_v28  ;;  %v3401_v43 = vadd.f32 %v1351_v16, %v1282_v23  ;;  %v1485_v6 = vadd.f32 %v1453_v33, %v1382_v19  ;;  %v935_v52 = vmul.f32 %v3297_v2, %v899_v39  ;;  %v3408_v54 = vmul.f32 %v3311_v14, %v1000_v13  ;;  %v813_v23 = vld [vmem:[#allocation2 + $0x168] sm:$0xff] }
 0x1c6   : > { %v1585_v31 = vadd.f32 %v1553_v30, %v1484_v11  ;;  %v1237_v63 = vmul.f32 %v3345_v55, %v899_v39  ;;  %v3412_v61 = vmul.f32 %v3357_v7, %v1000_v13  ;;  %v1540_v9 = vmul.f32 %v3394_v46, %v899_v39 }
 0x1c7   : > { %v1586_v17 = vadd.f32 %v3324_v47, %v1485_v6  ;;  %v1641_v24 = vmul.f32 %v3403_v1, %v1000_v13  ;;  %v951_v12 = vmul.f32 %v3297_v2, %v915_v21  ;;  %v3419_v18 = vmul.f32 %v3311_v14, %v1016_v57 }
 0x1c8   : > { %v1686_v62 = vadd.f32 %v1654_v44, %v1585_v31  ;;  %v3422_v48 = vmul.f32 %v3345_v55, %v915_v21  ;;  %v3425_v8 = vmul.f32 %v3357_v7, %v1016_v57  ;;  %v3429_v20 = vmul.f32 %v3394_v46, %v915_v21  ;;  %v3454_v21 = vld [vmem:[#allocation8 + $0x8] ss:$0 sm:$0xff]  ;;  %v914_v31 = vld [vmem:[#allocation2 + $0x169] sm:$0xff] }
 0x1c9   : > { %v1687_v47 = vadd.f32 %v3332_v36, %v1586_v17  ;;  %v833_v25 = vmul.f32 %v3326_v41, %v797_v29  ;;  %v834_v60 = vmul.f32 %v3326_v41, %v798_v40  ;;  %v3435_v27 = vmul.f32 %v3403_v1, %v1016_v57  ;;  %v814_v57 = vld [vmem:[#allocation2 + $0x170] sm:$0xff] }
 0x1ca   : > { %v1725_v16 = vadd.f32 %v2929_v34, %v1686_v62  ;;  %v934_v19 = vmul.f32 %v3297_v2, %v898_v32  ;;  %v1066_v3 = vadd.f32 %v3301_v37, %v3343_v53  ;;  %v1035_v39 = vmul.f32 %v3311_v14, %v999_v5 }
 0x1cb   : > { %v1726_v36 = vadd.f32 %v2929_v34, %v1687_v47  ;;  %v1135_v26 = vmul.f32 %v3371_v59, %v797_v29  ;;  %v1136_v28 = vmul.f32 %v3371_v59, %v798_v40  ;;  %v3446_v13 = vadd.f32 %v935_v52, %v834_v60 }
 0x1cc   : > { %1757 = vst.msk [vmem:[%s2947_s12 + $0xc0] sm:$0xff] %vm693_vm1, %v1725_v16  ;;  %v966_v33 = vadd.f32 %v934_v19, %v833_v25  ;;  %v1236_v11 = vmul.f32 %v3345_v55, %v898_v32  ;;  %v1368_v30 = vadd.f32 %v3305_v35, %v3364_v45  ;;  %v1438_v6 = vmul.f32 %v3454_v21, %v797_v29  ;;  %v1015_v45 = vld [vmem:[#allocation2 + $0x16a] sm:$0xff] }
 0x1cd   : > { %1758 = vst.msk [vmem:[%s2947_s12 + $0xc8] sm:$0xff] %vm693_vm1, %v1726_v36  ;;  %v1167_v37 = vadd.f32 %v1135_v26, %v3355_v51  ;;  %v1168_v53 = vadd.f32 %v1136_v28, %v1066_v3  ;;  %v1439_v44 = vmul.f32 %v3454_v21, %v798_v40  ;;  %v1337_v17 = vmul.f32 %v3357_v7, %v999_v5 }
 0x1ce   : > { %v3458_v52 = vadd.f32 %v1035_v39, %v966_v33  ;;  %v1539_v62 = vmul.f32 %v3394_v46, %v898_v32  ;;  %v849_v35 = vmul.f32 %v3326_v41, %v813_v23  ;;  %v1470_v51 = vadd.f32 %v1438_v6, %v3374_v10 }
 0x1cf   : > { %v1268_v47 = vadd.f32 %v1236_v11, %v1167_v37  ;;  %v1471_v25 = vadd.f32 %v1439_v44, %v1368_v30  ;;  %v1640_v60 = vmul.f32 %v3403_v1, %v999_v5  ;;  %v3465_v29 = vadd.f32 %v1237_v63, %v1168_v53  ;;  %v901_v53 = vld [vmem:[#allocation2 + $0xc9] sm:$0xff] }
 0x1d0   : > { %v850_v40 = vmul.f32 %v3326_v41, %v814_v57  ;;  %v950_v16 = vmul.f32 %v3297_v2, %v914_v31  ;;  %v1082_v19 = vadd.f32 %v3314_v58, %v3380_v22  ;;  %v1571_v3 = vadd.f32 %v1539_v62, %v1470_v51  ;;  %v3502_v51 = vld [vmem:[#allocation2 + $0x18a] sm:$0xff] }
 0x1d1   : > { %v1572_v32 = vadd.f32 %v1540_v9, %v1471_v25  ;;  %v1051_v36 = vmul.f32 %v3311_v14, %v1015_v45  ;;  %v1151_v39 = vmul.f32 %v3371_v59, %v813_v23  ;;  %v3473_v26 = vadd.f32 %v1337_v17, %v1268_v47  ;;  %v1002_v17 = vld [vmem:[#allocation2 + $0xca] sm:$0xff] }
 0x1d2   : > { %v982_v10 = vadd.f32 %v950_v16, %v849_v35  ;;  %v1152_v5 = vmul.f32 %v3371_v59, %v814_v57  ;;  %v1252_v63 = vmul.f32 %v3345_v55, %v914_v31  ;;  %v1672_v28 = vadd.f32 %v1640_v60, %v1571_v3  ;;  %v900_v16 = vld [vmem:[#allocation2 + $0xc1] sm:$0xff] }
 0x1d3   : > { %v1673_v33 = vadd.f32 %v1641_v24, %v1572_v32  ;;  %v1183_v11 = vadd.f32 %v1151_v39, %v3388_v0  ;;  %v1353_v30 = vmul.f32 %v3357_v7, %v1015_v45  ;;  %v3479_v58 = vadd.f32 %v951_v12, %v850_v40  ;;  %v800_v40 = vld [vmem:[#allocation2 + $0xc8] sm:$0xff] }
 0x1d4   : > { %v1184_v22 = vadd.f32 %v1152_v5, %v1082_v19  ;;  %v1384_v9 = vadd.f32 %v3320_v56, %v3391_v4  ;;  %v1454_v37 = vmul.f32 %v3454_v21, %v813_v23  ;;  %v1711_v6 = vadd.f32 %v2929_v34, %v1672_v28  ;;  %v1219_v4 = vld [vmem:[#allocation2 + $0x189] sm:$0xff] }
 0x1d5   : > { %v1712_v44 = vadd.f32 %v2929_v34, %v1673_v33  ;;  %v1284_v24 = vadd.f32 %v1252_v63, %v1183_v11  ;;  %v1455_v0 = vmul.f32 %v3454_v21, %v814_v57  ;;  %v3487_v62 = vadd.f32 %v1051_v36, %v982_v10  ;;  %v1001_v19 = vld [vmem:[#allocation2 + $0xc2] sm:$0xff] }
 0x1d6   : > { %v3490_v12 = vadd.f32 %v3422_v48, %v1184_v22  ;;  %v1486_v35 = vadd.f32 %v1454_v37, %v3401_v43  ;;  %v1555_v56 = vmul.f32 %v3394_v46, %v914_v31  ;;  %1743 = vst.msk [vmem:[%s2947_s12 + $0x50] sm:$0xff] %vm693_vm1, %v1711_v6  ;;  %v1656_v57 = vmul.f32 %v3403_v1, %v1015_v45  ;;  %v799_v48 = vld [vmem:[#allocation2 + $0xc0] sm:$0xff] }
 0x1d7   : > { %1744 = vst.msk [vmem:[%s2947_s12 + $0x58] sm:$0xff] %vm693_vm1, %v1712_v44  ;;  %v3498_v23 = vadd.f32 %v1353_v30, %v1284_v24  ;;  %v1487_v34 = vadd.f32 %v1455_v0, %v1384_v9  ;;  %v937_v47 = vmul.f32 %v3297_v2, %v901_v53  ;;  %v1038_v43 = vmul.f32 %v3311_v14, %v1002_v17  ;;  %v3528_v30 = vld [vmem:[%s3683_s4] ss:$0 sm:$0xff] }
 0x1d8   : > { %v1587_v25 = vadd.f32 %v1555_v56, %v1486_v35  ;;  %v1239_v31 = vmul.f32 %v3345_v55, %v901_v53  ;;  %v1340_v60 = vmul.f32 %v3357_v7, %v1002_v17  ;;  %v1542_v32 = vmul.f32 %v3394_v46, %v901_v53  ;;  %v1117_v56 = vld [vmem:[#allocation2 + $0x180] sm:$0xff] }
 0x1d9   : > { %v1588_v3 = vadd.f32 %v3429_v20, %v1487_v34  ;;  %v1643_v45 = vmul.f32 %v3403_v1, %v1002_v17  ;;  %v3511_v36 = vmul.f32 %v3345_v55, %v1219_v4  ;;  %v3515_v10 = vmul.f32 %v3357_v7, %v3502_v51 }
 0x1da   : > { %v1688_v39 = vadd.f32 %v1656_v57, %v1587_v25  ;;  %v3518_v5 = vmul.f32 %v3394_v46, %v1219_v4  ;;  %v835_v63 = vmul.f32 %v3326_v41, %v799_v48  ;;  %v836_v28 = vmul.f32 %v3326_v41, %v800_v40 }
 0x1db   : > { %v1689_v20 = vadd.f32 %v3435_v27, %v1588_v3  ;;  %v936_v33 = vmul.f32 %v3297_v2, %v900_v16  ;;  %v1037_v11 = vmul.f32 %v3311_v14, %v1001_v19  ;;  %v1068_v9 = vadd.f32 %v3408_v54, %v3446_v13  ;;  %v3744_v3 = vld [vmem:[#allocation18_spill] sm:$0xff] }
 0x1dc   : > { %v1727_v22 = vadd.f32 %v3528_v30, %v1688_v39  ;;  %v1137_v37 = vmul.f32 %v3371_v59, %v799_v48  ;;  %v1138_v27 = vmul.f32 %v3371_v59, %v800_v40  ;;  %v969_v53 = vadd.f32 %v937_v47, %v836_v28  ;;  %v3743_v47 = vld [vmem:[#allocation17_spill] sm:$0xff] }
 0x1dd   : > { %v1728_v41 = vadd.f32 %v3528_v30, %v1689_v20  ;;  %v968_v2 = vadd.f32 %v936_v33, %v835_v63  ;;  %v1238_v14 = vmul.f32 %v3345_v55, %v900_v16  ;;  %v1339_v24 = vmul.f32 %v3357_v7, %v1001_v19  ;;  %v1118_v63 = vld [vmem:[#allocation2 + $0x188] sm:$0xff] }
 0x1de   : > { %1759 = vst.msk [vmem:[%s2947_s12 + $0xd0] sm:$0xff] %vm693_vm1, %v1727_v22  ;;  %v1169_v6 = vadd.f32 %v1137_v37, %v3458_v52  ;;  %v1170_v44 = vadd.f32 %v1138_v27, %v1068_v9  ;;  %v1370_v54 = vadd.f32 %v3412_v61, %v3465_v29  ;;  %v1070_v0 = vadd.f32 %v1038_v43, %v969_v53  ;;  %v1218_v22 = vld [vmem:[#allocation2 + $0x181] sm:$0xff] }
 0x1df   : > { %1760 = vst.msk [vmem:[%s2947_s12 + $0xd8] sm:$0xff] %vm693_vm1, %v1728_v41  ;;  %v1069_v13 = vadd.f32 %v1037_v11, %v968_v2  ;;  %v1440_v17 = vmul.f32 %v3454_v21, %v799_v48  ;;  %v1441_v35 = vmul.f32 %v3454_v21, %v800_v40  ;;  %v1541_v57 = vmul.f32 %v3394_v46, %v900_v16  ;;  %v3746_v16 = vld [vmem:[#allocation13_spill] sm:$0xff]  ;;  %v3748_v27 = vld [vmem:[#allocation22_spill] sm:$0xff]  ;;  %v3749_v2 = vld [vmem:[#allocation20_spill] sm:$0xff] }
 0x1e0   : > { %v1270_v4 = vadd.f32 %v1238_v14, %v1169_v6  ;;  %v1271_v34 = vadd.f32 %v1239_v31, %v1170_v44  ;;  %v1642_v52 = vmul.f32 %v3403_v1, %v1001_v19  ;;  %v1172_v39 = vadd.f32 %v3744_v3, %v1070_v0  ;;  %v3745_v31 = vld [vmem:[#allocation19_spill] sm:$0xff]  ;;  %v3747_v9 = vld [vmem:[#allocation21_spill] sm:$0xff] }
 0x1e1   : > { %v1171_v25 = vadd.f32 %v3743_v47, %v1069_v13  ;;  %v1472_v61 = vadd.f32 %v1440_v17, %v3473_v26  ;;  %v1473_v29 = vadd.f32 %v1441_v35, %v1370_v54  ;;  %v1084_v48 = vadd.f32 %v3419_v18, %v3479_v58  ;;  %v3750_v18 = vld [vmem:[#allocation14_spill] sm:$0xff]  ;;  %v3751_v44 = vld [vmem:[#allocation23_spill] sm:$0xff]  ;;  %v3753_v35 = vld [vmem:[#allocation37_spill] sm:$0xff] }
 0x1e2   : > { %v1371_v43 = vadd.f32 %v1339_v24, %v1270_v4  ;;  %v1372_v20 = vadd.f32 %v1340_v60, %v1271_v34  ;;  %v1153_v40 = vmul.f32 %v3371_v59, %v1117_v56  ;;  %v1273_v33 = vadd.f32 %v3746_v16, %v1172_v39  ;;  %v3752_v54 = vld [vmem:[#allocation15_spill] sm:$0xff]  ;;  %v1319_v17 = vld [vmem:[#allocation2 + $0x182] sm:$0xff]  ;;  %v3756_v47 = vld [vmem:[#allocation16_spill] sm:$0xff] }
 0x1e3   : > { %v1272_v28 = vadd.f32 %v3745_v31, %v1171_v25  ;;  %v1573_v19 = vadd.f32 %v1541_v57, %v1472_v61  ;;  %v1574_v11 = vadd.f32 %v1542_v32, %v1473_v29  ;;  %v1154_v41 = vmul.f32 %v3371_v59, %v1118_v63  ;;  %v3754_v4 = vld [vmem:[#allocation38_spill] sm:$0xff]  ;;  %v3757_v61 = vld [vmem:[#allocation39_spill] sm:$0xff] }
 0x1e4   : > { %v1474_v37 = vadd.f32 %v3747_v9, %v1371_v43  ;;  %v1475_v26 = vadd.f32 %v3748_v27, %v1372_v20  ;;  %v1185_v60 = vadd.f32 %v1153_v40, %v3487_v62  ;;  %v1374_v58 = vadd.f32 %v3750_v18, %v1273_v33  ;;  %v1625_v40 = vld [vmem:[#allocation2 + $0x1a2] sm:$0xff]  ;;  %v3759_v33 = vld [vmem:[#allocation40_spill] sm:$0xff] }
 0x1e5   : > { %v1373_v53 = vadd.f32 %v3749_v2, %v1272_v28  ;;  %v1674_v14 = vadd.f32 %v1642_v52, %v1573_v19  ;;  %v1675_v6 = vadd.f32 %v1643_v45, %v1574_v11  ;;  %v1186_v13 = vadd.f32 %v1154_v41, %v1084_v48  ;;  %v3755_v52 = vld [vmem:[#allocation24_spill] sm:$0xff] }
 0x1e6   : > { %v1575_v24 = vadd.f32 %v3751_v44, %v1474_v37  ;;  %v1576_v32 = vadd.f32 %v3752_v54, %v1475_v26  ;;  %v1254_v0 = vmul.f32 %v3345_v55, %v1218_v22  ;;  %v1477_v62 = vadd.f32 %v3754_v4, %v1374_v58  ;;  %v3758_v55 = vld [vmem:[#allocation31_spill] sm:$0xff]  ;;  %v3760_v11 = vld [vmem:[#allocation32_spill] sm:$0xff] }
 0x1e7   : > { %v1476_v59 = vadd.f32 %v3753_v35, %v1373_v53  ;;  %v1713_v34 = vadd.f32 %v3528_v30, %v1674_v14  ;;  %v1714_v57 = vadd.f32 %v3528_v30, %v1675_v6  ;;  %v1287_v39 = vadd.f32 %v3511_v36, %v1186_v13 }
 0x1e8   : > { %v1676_v45 = vadd.f32 %v3755_v52, %v1575_v24  ;;  %v1677_v25 = vadd.f32 %v3756_v47, %v1576_v32  ;;  %v1286_v3 = vadd.f32 %v1254_v0, %v1185_v60  ;;  %v1578_v43 = vadd.f32 %v3758_v55, %v1477_v62 }
 0x1e9   : > { %v1577_v29 = vadd.f32 %v3757_v61, %v1476_v59  ;;  %1745 = vst.msk [vmem:[%s2947_s12 + $0x60] sm:$0xff] %vm693_vm1, %v1713_v34  ;;  %1746 = vst.msk [vmem:[%s2947_s12 + $0x68] sm:$0xff] %vm693_vm1, %v1714_v57  ;;  %v1355_v20 = vmul.f32 %v3357_v7, %v1319_v17  ;;  %v1386_v48 = vadd.f32 %v3425_v8, %v3490_v12 }
 0x1ea   : > { %v1715_v31 = vadd.f32 %v3528_v30, %v1676_v45  ;;  %v1716_v36 = vadd.f32 %v3528_v30, %v1677_v25  ;;  %v1388_v28 = vadd.f32 %v3515_v10, %v1287_v39  ;;  %v1456_v16 = vmul.f32 %v3454_v21, %v1117_v56 }
 0x1eb   : > { %v1678_v19 = vadd.f32 %v3759_v33, %v1577_v29  ;;  %v1679_v9 = vadd.f32 %v3760_v11, %v1578_v43  ;;  %v1387_v37 = vadd.f32 %v1355_v20, %v1286_v3  ;;  %v1457_v7 = vmul.f32 %v3454_v21, %v1118_v63 }
 0x1ec   : > { %1747 = vst.msk [vmem:[%s2947_s12 + $0x70] sm:$0xff] %vm693_vm1, %v1715_v31  ;;  %1748 = vst.msk [vmem:[%s2947_s12 + $0x78] sm:$0xff] %vm693_vm1, %v1716_v36  ;;  %v1488_v8 = vadd.f32 %v1456_v16, %v3498_v23  ;;  %v1491_v12 = vadd.f32 %v3117_v49, %v1388_v28  ;;  %v1557_v10 = vmul.f32 %v3394_v46, %v1218_v22 }
 0x1ed   : > { %v1661_v56 = vmul.f32 %v3403_v1, %v1625_v40  ;;  %v1717_v27 = vadd.f32 %v3528_v30, %v1678_v19  ;;  %v1718_v26 = vadd.f32 %v3528_v30, %v1679_v9  ;;  %v1489_v21 = vadd.f32 %v1457_v7, %v1386_v48 }
 0x1ee   : > { %v1490_v63 = vadd.f32 %v3114_v42, %v1387_v37  ;;  %v1589_v41 = vadd.f32 %v1557_v10, %v1488_v8  ;;  %v1592_v60 = vadd.f32 %v3123_v50, %v1491_v12  ;;  %v1658_v23 = vmul.f32 %v3403_v1, %v1319_v17 }
 0x1ef   : > { %v1659_v49 = vmul.f32 %v3403_v1, %v3502_v51  ;;  %1749 = vst.msk [vmem:[%s2947_s12 + $0x80] sm:$0xff] %vm693_vm1, %v1717_v27  ;;  %1750 = vst.msk [vmem:[%s2947_s12 + $0x88] sm:$0xff] %vm693_vm1, %v1718_v26  ;;  %v1590_v46 = vadd.f32 %v3518_v5, %v1489_v21 }
 0x1f0   : > { %v1591_v22 = vadd.f32 %v3120_v15, %v1490_v63  ;;  %v1690_v42 = vadd.f32 %v1658_v23, %v1589_v41  ;;  %v1693_v50 = vadd.f32 %v1661_v56, %v1592_v60 }
 0x1f1   : > { %v1691_v2 = vadd.f32 %v1659_v49, %v1590_v46 }
 0x1f2   : > { %v1692_v1 = vadd.f32 %v3131_v38, %v1591_v22  ;;  %v1729_v51 = vadd.f32 %v3528_v30, %v1690_v42  ;;  %v1732_v53 = vadd.f32 %v3528_v30, %v1693_v50 }
 0x1f3   : > { %v1730_v15 = vadd.f32 %v3528_v30, %v1691_v2 }
 0x1f4   : > { %v1731_v5 = vadd.f32 %v3528_v30, %v1692_v1  ;;  %1761 = vst.msk [vmem:[%s2947_s12 + $0xe0] sm:$0xff] %vm693_vm1, %v1729_v51  ;;  %1764 = vst.msk [vmem:[%s2947_s12 + $0xf8] sm:$0xff] %vm693_vm1, %v1732_v53 }
 0x1f5   : > { %1762 = vst.msk [vmem:[%s2947_s12 + $0xe8] sm:$0xff] %vm693_vm1, %v1730_v15 }
 0x1f6   : > { %1763 = vst.msk [vmem:[%s2947_s12 + $0xf0] sm:$0xff] %vm693_vm1, %v1731_v5 }
 0x1f7   : > { %2279 = shalt.err (!%p2276_p11)
}
 0x1f8   : > { %s2280_s30 = scalar_lea.hbm %s3618_s27, 4096  ;;  %s2284_s13 = scalar_lea.hbm %s3684_s5, 8192 }
 0x1f9   : > { %p2281_p0 = scmp.ne.s32.totalorder %s3618_s27, %s2280_s30  ;;  %p2285_p6 = scmp.lt.u32.totalorder %s3618_s27, %s3684_s5 }
 0x1fa   : > { %p2286_p7 = scmp.lt.u32.totalorder %s2284_s13, %s2280_s30  ;;  %p2288_p8 = scmp.lt.u32.totalorder %s2280_s30, %s3618_s27 }
 0x1fb   : > { %p2282_p4 = pnand %p2281_p0, %p3761_p12 }
 0x1fc   : > { %p2287_p2 = por %p2286_p7, %p2285_p6 }
 0x1fd   : > { %p2283_p13 = pneg %p2282_p4 }
 0x1fe   : > { %p2289_p1 = por %p2288_p8, %p2287_p2 }
 0x200   : > { %p2290_p10 = pnand %p2289_p1, %p2283_p13 }
 0x202   : > { %2293 = shalt.err (!%p2290_p10)
}
 0x203   : > { %s2363_s11 = smov 128   ;;  %s2364_s8 = smov 8  }
 0x204   : > { %2090 = dma.vmem_to_hbm [thread:$0]  (%p3761_p12), %s3620_s24, 4096, %s3618_s27, %s1766_s21, %s2363_s11, %s2363_s11, %s2364_s8  }
 0x205 PF: > { %s1795_s17 = sand.u32 1, %s2332_s18   ;;  %p3762_p3 = scmp.ne.s32.totalorder %s3693_s29, 0 }
 0x206   : > { %p3763_p5 = scmp.ge.s32.totalorder %s2352_s23, 2  ;;  %s1796_s25 = scalar_lea.sflag [#allocation5], %s1795_s17 }
 0x208   : > { %p2104_p9 = pnand %p3763_p5, %p3762_p3 }
 0x20a   : > { %2327 = dma.done.wait (!%p2104_p9), %s1796_s25, 4096  }
 0x20b   : > { %2329 = vsyncadd (!%p2104_p9), %s1796_s25, 4294963200  ;;  %s22_s23 = sadd.s32 1, %s2352_s23   ;;  %s3764_s18 = smov %s2336_s19 }
 0x20c   : > { %p19_p11 = scmp.ge.s32.totalorder %s22_s23, 4   ;;  %s3765_s19 = smov %s2340_s20 }
 0x20d   : > { %s3766_s20 = smov %s2540_s7  ;;  %s3767_s21 = smov %s2348_s22 }
 0x20e   : > { %s3768_s22 = smov %s3770_s14  ;;  %21 = sbr.rel (!%p19_p11) target bundleno = 7 (0x7), region = 105 }
 0x215   :  { %1801 = vsyncpa [#allocation4], 1 }
 0x216   :  { %1803 = vsyncpa [#allocation4 + $0x1], 1 }
 0x217   :  { %1804 = vsyncpa [#allocation7], 1 }
 0x218   :  { %1805 = vsyncpa [#allocation5], 1 }
 0x219   :  { %1807 = vsyncpa [#allocation5 + $0x1], 1 }

</bundles_post_ra>
